<compile_context>
chip_gen: v7x
topology: tpu7x:2x2x1
jax: 0.10.0
libtpu: 0.0.40
codegen_flags: <defaults>
</compile_context>

<pallas_src>
import jax
import jax.numpy as jnp
from jax.experimental import pallas as pl
from jax.experimental.pallas import tpu as pltpu


def _round_up(v, m):
    return ((v + m - 1) // m) * m


# ---------------------------------------------------------------------------
# Kernel
# ---------------------------------------------------------------------------
def _attention_pool_kernel(x_ref, wsv_ref, bsv_ref, wo_ref, bo_ref, o_ref):
    """One grid step processes a (bn*P, D_in) slab of flattened (batch, part) rows."""
    rows, _ = x_ref.shape
    two_inner = wsv_ref.shape[-1]
    inner = two_inner // 2
    bn = o_ref.shape[0]
    P = rows // bn

    # One fused projection for scores|values: lane-dense (rows, 2*inner_p).
    sv = jnp.dot(x_ref[...], wsv_ref[...],
                 preferred_element_type=jnp.float32) + bsv_ref[...]
    sv = sv.reshape(bn, P, two_inner)     # sublane split at P=8 boundary: free
    s = sv[..., :inner]                   # scores, head-replicated across lanes
    v = sv[..., inner:]                   # values

    # Softmax over the parts axis (sublane reduce), lane-dense across inner_p.
    m = jnp.max(s, axis=1, keepdims=True)
    p = jnp.exp(s - m)
    l = jnp.sum(p, axis=1, keepdims=True)
    attn = p / l                          # exact reciprocal (posterior/KL input)

    # Attention-weighted pooling of the values: (bn, inner_p).
    pooled = jnp.sum(attn * v, axis=1)

    # Output projection: dense (bn, D_out_p) rows -> unmasked stores.
    y = jnp.dot(pooled.astype(wo_ref.dtype), wo_ref[...],
                preferred_element_type=jnp.float32) + bo_ref[...]
    o_ref[...] = y.astype(o_ref.dtype)


# ---------------------------------------------------------------------------
# Wrapper: weight fusion + padding + pallas_call
# ---------------------------------------------------------------------------
def _prepare_fused_params(params, *, heads, dim_head, compute_dtype=None):
    """Fold input_proj, to_q and the attention scale into two padded projections."""
    D_out = params["part_query"].shape[-1]
    inner = heads * dim_head
    scale = dim_head ** -0.5
    inner_p = _round_up(inner, 128)
    d_out_p = _round_up(D_out, 128)

    w_in = params["w_in"].astype(jnp.float32)             # (D_out, D_in)
    b_in = params["b_in"].astype(jnp.float32)             # (D_out,)
    w_q = params["w_q"].astype(jnp.float32)               # (inner, D_out)
    w_kv = params["w_kv"].astype(jnp.float32)             # (2*inner, D_out)
    w_out = params["w_out"].astype(jnp.float32)           # (D_out, inner)
    b_out = params["b_out"].astype(jnp.float32)           # (D_out,)
    pq = params["part_query"].reshape(1, D_out).astype(jnp.float32)

    w_k = w_kv[:inner]                                     # (inner, D_out)
    w_v = w_kv[inner:]                                     # (inner, D_out)

    # Batch-invariant query projection, computed once host-side.
    q = pq @ w_q.T                                         # (1, inner)

    # Fold q and the scale into the K projection: sim[..., h] = xp @ w_sim[:, h].
    w_sim = scale * (w_k * q[0][:, None]).reshape(
        heads, dim_head, D_out).sum(axis=1).T              # (D_out, heads)

    # Replicate each head's score column across its dim_head lanes so the
    # softmax and attn*v are fully lane-dense (no per-head slicing in-kernel).
    expand = jnp.repeat(jnp.eye(heads, dtype=jnp.float32), dim_head, axis=1)
    w_sim_big = w_sim @ expand                             # (D_out, inner)

    # Fuse input_proj:  xp = x @ w_in.T + b_in  =>  xp @ A = x @ (w_in.T @ A) + b_in @ A
    w_s = w_in.T @ w_sim_big                               # (D_in, inner)
    b_s = b_in @ w_sim_big                                 # (inner,)
    w_vp = w_in.T @ w_v.T                                  # (D_in, inner)
    b_vp = b_in @ w_v.T                                    # (inner,)

    # Zero-pad inner -> inner_p and concatenate scores|values into ONE
    # projection (padded lanes produce zero values, so the output is unchanged).
    def pad_cols(a, width):
        return jnp.pad(a, ((0, 0), (0, width - a.shape[-1])))

    w_sv = jnp.concatenate([pad_cols(w_s, inner_p), pad_cols(w_vp, inner_p)],
                           axis=1)                         # (D_in, 2*inner_p)
    b_sv = jnp.concatenate([pad_cols(b_s[None, :], inner_p),
                            pad_cols(b_vp[None, :], inner_p)],
                           axis=1)                         # (1, 2*inner_p)

    # Output projection zero-padded to (inner_p, D_out_p) -> lane-dense store.
    w_o = jnp.zeros((inner_p, d_out_p), jnp.float32).at[:inner, :D_out].set(w_out.T)
    b_o = jnp.zeros((1, d_out_p), jnp.float32).at[0, :D_out].set(b_out)

    if compute_dtype is not None:
        w_sv = w_sv.astype(compute_dtype)
        w_o = w_o.astype(compute_dtype)
    return w_sv, b_sv, w_o, b_o, inner_p, d_out_p


def _pick_block_n(N, block_n):
    """Batch block: multiple of 8 (or all of N when tiny), >=2 steps when N>=16."""
    if N <= 8:
        return N
    bn = min(block_n, N)
    bn = (bn // 8) * 8
    if bn >= N and N >= 16:
        bn = ((N // 2) // 8) * 8       # keep >=2 grid steps (v7x megacore)
    return max(bn, 8)


def part_latent_aggregator(x, params, *, heads, dim_head,
                           block_n=512, compute_dtype=jnp.bfloat16):
    """x: (N, P, D_in) -> (N, D_out)."""
    N, P, D_in = x.shape
    D_out = params["part_query"].shape[-1]
    out_dtype = x.dtype

    w_sv, b_sv, w_o, b_o, inner_p, d_out_p = _prepare_fused_params(
        params, heads=heads, dim_head=dim_head, compute_dtype=compute_dtype)

    if compute_dtype is not None:
        x = x.astype(compute_dtype)

    bn = _pick_block_n(N, block_n)
    grid = (pl.cdiv(N, bn),)
    # NOTE: if N % bn != 0 the trailing rows of the last block are garbage that
    # flows through exp/divide but only into output rows Pallas drops.

    # Present x 2-D: removes the in-kernel flatten reshape.
    x2 = x.reshape(N * P, D_in)

    out_p = pl.pallas_call(
        _attention_pool_kernel,
        out_shape=jax.ShapeDtypeStruct((N, d_out_p), out_dtype),
        grid=grid,
        in_specs=[
            pl.BlockSpec((bn * P, D_in), lambda i: (i, 0)),      # x slab
            pl.BlockSpec((D_in, 2 * inner_p), lambda i: (0, 0)),  # W_score|W_value
            pl.BlockSpec((1, 2 * inner_p), lambda i: (0, 0)),     # b_score|b_value
            pl.BlockSpec((inner_p, d_out_p), lambda i: (0, 0)),   # W_out^T (padded)
            pl.BlockSpec((1, d_out_p), lambda i: (0, 0)),         # b_out (padded)
        ],
        out_specs=pl.BlockSpec((bn, d_out_p), lambda i: (i, 0)),
        compiler_params=pltpu.CompilerParams(
            dimension_semantics=("parallel",),
            vmem_limit_bytes=48 * 1024 * 1024),
    )(x2, w_sv, b_sv, w_o, b_o)

    return out_p[:, :D_out]


# ---------------------------------------------------------------------------
# Pure-JAX reference of the PyTorch forward (unfused)
# ---------------------------------------------------------------------------
def _reference(x, params, *, heads, dim_head):
    N, P, D_in = x.shape
    D_out = params["part_query"].shape[-1]
    inner = heads * dim_head
    scale = dim_head ** -0.5

    xp = x @ params["w_in"].T + params["b_in"]                       # (N, P, D_out)
    q = jnp.broadcast_to(params["part_query"], (N, 1, D_out))
    q = q @ params["w_q"].T                                          # (N, 1, inner)
    kv = xp @ params["w_kv"].T                                       # (N, P, 2*inner)
    k, v = kv[..., :inner], kv[..., inner:]

    qh = q.reshape(N, 1, heads, dim_head).transpose(0, 2, 1, 3)      # (N, H, 1, dh)
    kh = k.reshape(N, P, heads, dim_head).transpose(0, 2, 1, 3)      # (N, H, P, dh)
    vh = v.reshape(N, P, heads, dim_head).transpose(0, 2, 1, 3)

    sim = jnp.einsum("nhid,nhjd->nhij", qh, kh) * scale
    attn = jax.nn.softmax(sim, axis=-1)
    out = jnp.einsum("nhij,nhjd->nhid", attn, vh)                    # (N, H, 1, dh)
    out = out.transpose(0, 2, 1, 3).reshape(N, 1, inner)
    out = out @ params["w_out"].T + params["b_out"]
    return out[:, 0, :]


def _init_params(key, input_dim, output_dim, heads, dim_head):
    inner = heads * dim_head
    ks = jax.random.split(key, 6)
    return {
        "part_query": jax.random.normal(ks[0], (1, 1, output_dim), jnp.float32)
                      * (2.0 / output_dim) ** 0.5,
        "w_in":  jax.random.normal(ks[1], (output_dim, input_dim), jnp.float32)
                 * (1.0 / input_dim) ** 0.5,
        "b_in":  jnp.zeros((output_dim,), jnp.float32),
        "w_q":   jax.random.normal(ks[2], (inner, output_dim), jnp.float32)
                 * (1.0 / output_dim) ** 0.5,
        "w_kv":  jax.random.normal(ks[3], (2 * inner, output_dim), jnp.float32)
                 * (1.0 / output_dim) ** 0.5,
        "w_out": jax.random.normal(ks[4], (output_dim, inner), jnp.float32)
                 * (1.0 / inner) ** 0.5,
        "b_out": jax.random.normal(ks[5], (output_dim,), jnp.float32) * 0.01,
    }


if __name__ == "__main__":
    N, P = 64, 8                   # 64 objects, 8 parts each
    input_dim, output_dim = 32, 64
    heads, dim_head = 4, 16

    key = jax.random.PRNGKey(0)
    kp, kx = jax.random.split(key)
    params = _init_params(kp, input_dim, output_dim, heads, dim_head)
    x = jax.random.normal(kx, (N, P, input_dim), jnp.float32)

    ref = _reference(x, params, heads=heads, dim_head=dim_head)

    # f32 operand path: algebraic fusion only reassociates fp ops -> tight tol.
    out_f32 = part_latent_aggregator(x, params, heads=heads, dim_head=dim_head,
                                     compute_dtype=None)
    out_f32 = jax.block_until_ready(out_f32)
    assert out_f32.shape == (N, output_dim)
    assert jnp.allclose(out_f32, ref, atol=5e-3, rtol=5e-3), \
        "f32 kernel mismatch vs reference"

    # Default bf16 operand path (MXU-native on v6e/v7x, halves x DMA bytes),
    # f32 accumulation; looser tolerance for the bf16 cast + fp reorder.
    out_bf16 = part_latent_aggregator(x, params, heads=heads, dim_head=dim_head)
    out_bf16 = jax.block_until_ready(out_bf16)
    assert out_bf16.shape == (N, output_dim)
    assert jnp.allclose(out_bf16.astype(jnp.float32), ref,
                        atol=1e-1, rtol=1e-1), \
        "bf16 kernel mismatch vs reference"

    print("KERNEL_OK")
</pallas_src>

<mosaic_0001>
module attributes {stable_mosaic.version = 11 : i64} {
  func.func @_attention_pool_kernel(%arg0: i32, %arg1: memref<256x32xf32, #tpu.memory_space<vmem>>, %arg2: memref<32x256xf32, #tpu.memory_space<vmem>>, %arg3: memref<1x256xf32, #tpu.memory_space<vmem>>, %arg4: memref<128x128xf32, #tpu.memory_space<vmem>>, %arg5: memref<1x128xf32, #tpu.memory_space<vmem>>, %arg6: memref<32x128xf32, #tpu.memory_space<vmem>>) attributes {dimension_semantics = [#tpu.dimension_semantics<parallel>], iteration_bounds = array<i64: 2>, scalar_prefetch = 0 : i64, scratch_operands = 0 : i64, tpu.core_type = #tpu.core_type<tc>, window_params = [{transform_indices = @transform_0, window_bounds = array<i64: 256, 32>}, {pipeline_mode = #tpu.pipeline_mode<synchronous>, transform_indices = @transform_1, window_bounds = array<i64: 32, 256>}, {pipeline_mode = #tpu.pipeline_mode<synchronous>, transform_indices = @transform_2, window_bounds = array<i64: 1, 256>}, {pipeline_mode = #tpu.pipeline_mode<synchronous>, transform_indices = @transform_3, window_bounds = array<i64: 128, 128>}, {pipeline_mode = #tpu.pipeline_mode<synchronous>, transform_indices = @transform_4, window_bounds = array<i64: 1, 128>}, {transform_indices = @transform_5, window_bounds = array<i64: 32, 128>}]} {
    %c0 = arith.constant 0 : index
    %c0_0 = arith.constant 0 : index
    %0 = vector.load %arg1[%c0, %c0_0] : memref<256x32xf32, #tpu.memory_space<vmem>>, vector<256x32xf32>
    %c0_1 = arith.constant 0 : index
    %c0_2 = arith.constant 0 : index
    %1 = vector.load %arg2[%c0_1, %c0_2] : memref<32x256xf32, #tpu.memory_space<vmem>>, vector<32x256xf32>
    %cst = arith.constant dense<0.000000e+00> : vector<256x256xf32>
    %2 = tpu.matmul %0, %1, %cst {dimension_numbers = #tpu.dot_dimension_numbers<[1], [0], [0], [1], [0, 0, 1, 1], [], []>} : vector<256x32xf32>, vector<32x256xf32>, vector<256x256xf32> -> vector<256x256xf32>
    %c0_3 = arith.constant 0 : index
    %c0_4 = arith.constant 0 : index
    %3 = vector.load %arg3[%c0_3, %c0_4] : memref<1x256xf32, #tpu.memory_space<vmem>>, vector<1x256xf32>
    %4 = vector.broadcast %3 : vector<1x256xf32> to vector<256x256xf32>
    %5 = arith.addf %2, %4 : vector<256x256xf32>
    %6 = vector.shape_cast %5 : vector<256x256xf32> to vector<32x8x256xf32>
    %7 = vector.extract_strided_slice %6 {offsets = [0, 0, 0], sizes = [32, 8, 128], strides = [1, 1, 1]} : vector<32x8x256xf32> to vector<32x8x128xf32>
    %8 = vector.extract_strided_slice %6 {offsets = [0, 0, 128], sizes = [32, 8, 128], strides = [1, 1, 1]} : vector<32x8x256xf32> to vector<32x8x128xf32>
    %cst_5 = arith.constant dense<0xFF800000> : vector<32x128xf32>
    %9 = vector.multi_reduction <maximumf>, %7, %cst_5 [1] : vector<32x8x128xf32> to vector<32x128xf32>
    %10 = vector.shape_cast %9 : vector<32x128xf32> to vector<32x1x128xf32>
    %11 = vector.broadcast %10 : vector<32x1x128xf32> to vector<32x8x128xf32>
    %12 = arith.subf %7, %11 : vector<32x8x128xf32>
    %13 = math.exp %12 : vector<32x8x128xf32>
    %cst_6 = arith.constant dense<0.000000e+00> : vector<32x128xf32>
    %14 = vector.multi_reduction <add>, %13, %cst_6 [1] : vector<32x8x128xf32> to vector<32x128xf32>
    %15 = vector.shape_cast %14 : vector<32x128xf32> to vector<32x1x128xf32>
    %16 = vector.broadcast %15 : vector<32x1x128xf32> to vector<32x8x128xf32>
    %17 = arith.divf %13, %16 : vector<32x8x128xf32>
    %18 = arith.mulf %17, %8 : vector<32x8x128xf32>
    %cst_7 = arith.constant dense<0.000000e+00> : vector<32x128xf32>
    %19 = vector.multi_reduction <add>, %18, %cst_7 [1] : vector<32x8x128xf32> to vector<32x128xf32>
    %c0_8 = arith.constant 0 : index
    %c0_9 = arith.constant 0 : index
    %20 = vector.load %arg4[%c0_8, %c0_9] : memref<128x128xf32, #tpu.memory_space<vmem>>, vector<128x128xf32>
    %cst_10 = arith.constant dense<0.000000e+00> : vector<32x128xf32>
    %21 = tpu.matmul %19, %20, %cst_10 {dimension_numbers = #tpu.dot_dimension_numbers<[1], [0], [0], [1], [0, 0, 1, 1], [], []>} : vector<32x128xf32>, vector<128x128xf32>, vector<32x128xf32> -> vector<32x128xf32>
    %c0_11 = arith.constant 0 : index
    %c0_12 = arith.constant 0 : index
    %22 = vector.load %arg5[%c0_11, %c0_12] : memref<1x128xf32, #tpu.memory_space<vmem>>, vector<1x128xf32>
    %23 = vector.broadcast %22 : vector<1x128xf32> to vector<32x128xf32>
    %24 = arith.addf %21, %23 : vector<32x128xf32>
    %c0_13 = arith.constant 0 : index
    %c0_14 = arith.constant 0 : index
    %25 = vector.load %arg6[%c0_13, %c0_14] : memref<32x128xf32, #tpu.memory_space<vmem>>, vector<32x128xf32>
    tpu.vector_store %arg6[%c0_13, %c0_14], %24 {strides = array<i32>} : memref<32x128xf32, #tpu.memory_space<vmem>>, vector<32x128xf32>,
    return
  }
  func.func @transform_0(%arg0: i32) -> (i32, i32) {
    %c0_i32 = arith.constant 0 : i32
    %c0_i32_0 = arith.constant 0 : i32
    return %arg0, %c0_i32 : i32, i32
  }
  func.func @transform_1(%arg0: i32) -> (i32, i32) {
    %c0_i32 = arith.constant 0 : i32
    %c0_i32_0 = arith.constant 0 : i32
    %c0_i32_1 = arith.constant 0 : i32
    return %c0_i32, %c0_i32_0 : i32, i32
  }
  func.func @transform_2(%arg0: i32) -> (i32, i32) {
    %c0_i32 = arith.constant 0 : i32
    %c0_i32_0 = arith.constant 0 : i32
    %c0_i32_1 = arith.constant 0 : i32
    return %c0_i32, %c0_i32_0 : i32, i32
  }
  func.func @transform_3(%arg0: i32) -> (i32, i32) {
    %c0_i32 = arith.constant 0 : i32
    %c0_i32_0 = arith.constant 0 : i32
    %c0_i32_1 = arith.constant 0 : i32
    return %c0_i32, %c0_i32_0 : i32, i32
  }
  func.func @transform_4(%arg0: i32) -> (i32, i32) {
    %c0_i32 = arith.constant 0 : i32
    %c0_i32_0 = arith.constant 0 : i32
    %c0_i32_1 = arith.constant 0 : i32
    return %c0_i32, %c0_i32_0 : i32, i32
  }
  func.func @transform_5(%arg0: i32) -> (i32, i32) {
    %c0_i32 = arith.constant 0 : i32
    %c0_i32_0 = arith.constant 0 : i32
    return %arg0, %c0_i32 : i32, i32
  }
}

</mosaic_0001>

<bundles_post_ra>
// kernel: tpu_custom_call.1
= control target key start
LH: loop header
LB: loop body
LE: loop exit
PB: predicated region body
PF: predicated region fallthrough
CT: control target
= control target key end

     0   :  { %10 = vsyncpa [#allocation3], 0  ;;  %s3051_s0 = inlined_call_operand.vmem [shape: f32[512,32], index: 0, kind: input, shape index: {}]   ;;  %s3052_s1 = inlined_call_operand.vmem [shape: f32[32,256], index: 1, kind: input, shape index: {}]   ;;  %s3053_s2 = inlined_call_operand.vmem [shape: f32[1,256], index: 2, kind: input, shape index: {}]   ;;  %s3054_s3 = inlined_call_operand.vmem [shape: f32[128,128], index: 3, kind: input, shape index: {}]   ;;  %s3055_s4 = inlined_call_operand.vmem [shape: f32[1,128], index: 4, kind: input, shape index: {}]   ;;  %s3056_s5 = inlined_call_operand.hbm [shape: f32[64,128], index: 5, kind: output, shape index: {}]  }
   0x1   :  { %12 = vsyncpa [#allocation3 + $0x1], 0  ;;  %s2075_s18 = smov 0   ;;  %s2077_s19 = smov 0  }
   0x2   :  { %s2079_s20 = smov 0   ;;  %s2081_s21 = smov 0  }
   0x3 LB: > { %s2096_s22 = sadd.s32 4294967295, %s2039_s21   ;;  %s1659_s23 = sadd.s32 4294967294, %s2039_s21   ;;  %s2039_s21 = sphi %s2081_s21, %s3099_s21   ;;  %s2035_s20 = sphi %s2079_s20, %s3098_s20   ;;  %s2031_s19 = sphi %s2077_s19, %s3097_s19   ;;  %s2027_s18 = sphi %s2075_s18, %s3096_s18  }
   0x4   : > { %s2100_s24 = sadd.s32 1, %s2039_s21   ;;  %s135_s25 = sadd.s32 1, %s2035_s20 }
   0x5   : > { %s132_s26 = ssub.s32 %s2039_s21, %s2100_s24  ;;  %p145_p0 = scmp.ne.s32.totalorder %s2035_s20, %s2031_s19 }
   0x6   : > { %p133_p1 = scmp.eq.s32.totalorder %s132_s26, 0  ;;  %p146_p2 = scmp.eq.s32.totalorder %s2096_s22, 1 }
   0x7   : > { %p151_p3 = scmp.ne.s32.totalorder %s2031_s19, %s2027_s18  ;;  %p152_p4 = scmp.eq.s32.totalorder %s1659_s23, 1 }
   0x8   : > { %s2111_s27 = scalar_select %p133_p1, %s2035_s20, %s135_s25  }
   0x9   : > { %p2113_p5 = por %p146_p2, %p145_p0  ;;  %p2117_p6 = por %p152_p4, %p151_p3 }
   0xa   : > { %p1662_p7 = scmp.ge.s32.totalorder %s2039_s21, 1  ;;  %p191_p8 = scmp.lt.s32.totalorder %s2039_s21, 3 }
   0xc   : > { %p192_p9 = pnand %p1662_p7, %p191_p8 }
   0xe   : > { %195 = sbr.rel (%p192_p9) target bundleno = 721 (0x2d1), region = 40 }
  0x15   : > { %v259_v0 = vld [vmem:[%s3052_s1 + $0x8] sm:$0xff]  ;;  %v261_v1 = vld [vmem:[%s3052_s1 + $0x18] sm:$0xff]  ;;  %v258_v2 = vld [vmem:[%s3052_s1] sm:$0xff]  ;;  %s1664_s11 = sshll.u32 %s2096_s22, 5  ;;  %v2041_v7 = vmov 0.0   ;;  %vm278_vm0 = vcmask 261120   ;;  %v268_v45 = vlaneseq }
  0x16   : > { %v1763_v3 = vpack.c.bf16 %v261_v1, %v259_v0  ;;  %v260_v4 = vld [vmem:[%s3052_s1 + $0x10] sm:$0xff]  ;;  %v263_v5 = vld [vmem:[%s3052_s1 + $0x28] sm:$0xff]  ;;  %v265_v6 = vld [vmem:[%s3052_s1 + $0x38] sm:$0xff]  ;;  %439 = vmatprep.mubr.f32.mxu0 %v2041_v7  ;;  %541 = vmatprep.mubr.f32.mxu1 %v2041_v7  ;;  %p220_p10 = scmp.lt.s32.totalorder %s1664_s11, 63  ;;  %vm1455_vm1 = vcmask 1041409   ;;  %vm1457_vm2 = vcmask 1042434  }
  0x17   : > { %v1765_v8 = vpack.c.bf16 %v260_v4, %v258_v2  ;;  %v1767_v9 = vpack.c.bf16 %v265_v6, %v263_v5  ;;  %v262_v10 = vld [vmem:[%s3052_s1 + $0x20] sm:$0xff]  ;;  %v264_v11 = vld [vmem:[%s3052_s1 + $0x30] sm:$0xff]  ;;  %v2249_v46 = vshrl.u32 %v268_v45, 7  ;;  %vm1459_vm3 = vcmask 1043459   ;;  %s216_s12 = sand.u32 1, %s2031_s19   ;;  %s1704_s23 = sshll.u32 %s2096_s22, 9 }
  0x18   : > { %1764 = vmatprep.subr.bf16.mxu0 %v1763_v3  ;;  %1803 = vmatprep.subr.bf16.mxu1 %v1763_v3  ;;  %s3101_s11 = smov (!%p220_p10, %s1664_s11), 63  ;;  %v1769_v12 = vpack.c.bf16 %v264_v11, %v262_v10  ;;  %v2255_v48 = vld [vmem:[%s3053_s2] sm:$0x3]  ;;  %vm1461_vm4 = vcmask 1044484   ;;  %vm1463_vm5 = vcmask 1045509   ;;  %vm1465_vm6 = vcmask 1046534   ;;  %s3008_s30 = scalar_lea.hbm %s3056_s5, %s1704_s23 }
  0x19   : > { %1766 = vmatpush1.bf16.msra.mxu0 %v1765_v8  ;;  %1805 = vmatpush1.bf16.msra.mxu1 %v1765_v8  ;;  %s1665_s6 = sshll.u32 %s3101_s11, 3  ;;  %v270_v47 = vsub.s32 0, %v2249_v46  ;;  %vm1467_vm7 = vcmask 1047559   ;;  %s1663_s13 = sshll.u32 %s216_s12, 5 }
  0x1a   : > { %1768 = vmatprep.subr.bf16.mxu0 %v1767_v9  ;;  %1804 = vmatprep.subr.bf16.mxu1 %v1767_v9  ;;  %s2153_s9 = scalar_lea.vmem %s3051_s0, %s1665_s6  ;;  %s218_s16 = scalar_lea.vmem [#allocation2], %s1663_s13 }
  0x1b   : > { %v226_v13 = vld [vmem:[%s2153_s9] sm:$0xff]  ;;  %v243_v14 = vld [vmem:[%s2153_s9 + $0x88] sm:$0xff]  ;;  %v244_v16 = vld [vmem:[%s2153_s9 + $0x90] sm:$0xff]  ;;  %v2258_v49 = vrot.slane %v2255_v48, %v270_v47  ;;  %s1597_s17 = sshll.u32 %s218_s16, 4  ;;  %s3010_s6 = scalar_lea.sflag [#allocation3], %s216_s12  ;;  %s3003_s17 = int_to_ptr.vmem [resolvable:$true] %s1597_s17 }
  0x1c   : > { %v227_v15 = vld [vmem:[%s2153_s9 + $0x8] sm:$0xff]  ;;  %v228_v17 = vld [vmem:[%s2153_s9 + $0x10] sm:$0xff]  ;;  %v245_v18 = vld [vmem:[%s2153_s9 + $0x98] sm:$0xff]  ;;  %s1977_s7 = scalar_lea.vmem %s3003_s17, 512  ;;  %s2042_s22 = smov [#allocation2]  }
  0x1d   : > { %1770 = vmatpush1.bf16.msra.mxu0 %v1769_v12  ;;  %1806 = vmatpush1.bf16.msra.mxu1 %v1769_v12  ;;  %v229_v19 = vld [vmem:[%s2153_s9 + $0x18] sm:$0xff]  ;;  %v246_v20 = vld [vmem:[%s2153_s9 + $0xa0] sm:$0xff]  ;;  %v247_v22 = vld [vmem:[%s2153_s9 + $0xa8] sm:$0xff]  ;;  %p1978_p11 = scmp.ne.s32.totalorder %s3003_s17, %s1977_s7  ;;  %s1981_s8 = sshll.u32 %s2042_s22, 4  ;;  %s1982_s8 = int_to_ptr.vmem [resolvable:$false] %s1981_s8 }
  0x1e   : > { %v230_v21 = vld [vmem:[%s2153_s9 + $0x20] sm:$0xff]  ;;  %v231_v23 = vld [vmem:[%s2153_s9 + $0x28] sm:$0xff]  ;;  %v248_v24 = vld [vmem:[%s2153_s9 + $0xb0] sm:$0xff]  ;;  %p1984_p0 = scmp.lt.s32.totalorder %s3003_s17, %s1982_s8 }
  0x1f   : > { %v232_v25 = vld [vmem:[%s2153_s9 + $0x30] sm:$0xff]  ;;  %v249_v26 = vld [vmem:[%s2153_s9 + $0xb8] sm:$0xff]  ;;  %v250_v28 = vld [vmem:[%s2153_s9 + $0xc0] sm:$0xff]  ;;  %p1979_p12 = pnand %p1978_p11, %p2113_p5 }
  0x20   : > { %1666 = vmatmul.mubr.msk.f32.vlgmr.msra.gmra.mrb[0].mxu0 %vm278_vm0, %v226_v13  ;;  %1683 = vmatmul.mubr.msk.f32.vlgmr.msra.gmra.mrb[0].mxu1 %vm278_vm0, %v243_v14  ;;  %v233_v27 = vld [vmem:[%s2153_s9 + $0x38] sm:$0xff]  ;;  %v234_v29 = vld [vmem:[%s2153_s9 + $0x40] sm:$0xff]  ;;  %v251_v30 = vld [vmem:[%s2153_s9 + $0xc8] sm:$0xff] }
  0x21   : > { %445 = vmatprep.mubr.f32.mxu0 %v2041_v7  ;;  %547 = vmatprep.mubr.f32.mxu1 %v2041_v7  ;;  %v235_v31 = vld [vmem:[%s2153_s9 + $0x48] sm:$0xff]  ;;  %v252_v32 = vld [vmem:[%s2153_s9 + $0xd0] sm:$0xff]  ;;  %v253_v34 = vld [vmem:[%s2153_s9 + $0xd8] sm:$0xff]  ;;  %p1980_p13 = pneg %p1979_p12 }
  0x22   : > { %v236_v33 = vld [vmem:[%s2153_s9 + $0x50] sm:$0xff]  ;;  %v237_v35 = vld [vmem:[%s2153_s9 + $0x58] sm:$0xff]  ;;  %v254_v36 = vld [vmem:[%s2153_s9 + $0xe0] sm:$0xff] }
  0x23   : > { %v238_v37 = vld [vmem:[%s2153_s9 + $0x60] sm:$0xff]  ;;  %v255_v38 = vld [vmem:[%s2153_s9 + $0xe8] sm:$0xff]  ;;  %v256_v40 = vld [vmem:[%s2153_s9 + $0xf0] sm:$0xff] }
  0x24   : > { %1667 = vmatmul.mubr.msk.f32.gmra.mrb[2].mxu0 %vm278_vm0, %v227_v15  ;;  %1684 = vmatmul.mubr.msk.f32.gmra.mrb[2].mxu1 %vm278_vm0, %v244_v16  ;;  %v239_v39 = vld [vmem:[%s2153_s9 + $0x68] sm:$0xff]  ;;  %v240_v41 = vld [vmem:[%s2153_s9 + $0x70] sm:$0xff]  ;;  %v257_v42 = vld [vmem:[%s2153_s9 + $0xf8] sm:$0xff] }
  0x25   : > { %451 = vmatprep.mubr.f32.mxu0 %v2041_v7  ;;  %553 = vmatprep.mubr.f32.mxu1 %v2041_v7  ;;  %v241_v43 = vld [vmem:[%s2153_s9 + $0x78] sm:$0xff]  ;;  %v242_v44 = vld [vmem:[%s2153_s9 + $0x80] sm:$0xff]  ;;  %s1983_s9 = scalar_lea.vmem %s1982_s8, 1024 }
  0x26   : > { %p1985_p1 = scmp.lt.s32.totalorder %s1983_s9, %s1977_s7 }
  0x28   : > { %1668 = vmatmul.mubr.msk.f32.gmra.mrb[4].mxu0 %vm278_vm0, %v228_v17  ;;  %1685 = vmatmul.mubr.msk.f32.gmra.mrb[4].mxu1 %vm278_vm0, %v245_v18  ;;  %p1986_p2 = por %p1985_p1, %p1984_p0 }
  0x29   : > { %457 = vmatprep.mubr.f32.mxu0 %v2041_v7  ;;  %559 = vmatprep.mubr.f32.mxu1 %v2041_v7 }
  0x2a   : > { %p1987_p3 = pnand %p1986_p2, %p1980_p13 }
  0x2c   : > { %1669 = vmatmul.mubr.msk.f32.gmra.mrb[6].mxu0 %vm278_vm0, %v229_v19  ;;  %1686 = vmatmul.mubr.msk.f32.gmra.mrb[6].mxu1 %vm278_vm0, %v246_v20 }
  0x2d   : > { %463 = vmatprep.mubr.f32.mxu0 %v2041_v7  ;;  %565 = vmatprep.mubr.f32.mxu1 %v2041_v7 }
  0x30   : > { %1670 = vmatmul.mubr.msk.f32.gmra.mrb[8].mxu0 %vm278_vm0, %v230_v21  ;;  %1687 = vmatmul.mubr.msk.f32.gmra.mrb[8].mxu1 %vm278_vm0, %v247_v22 }
  0x31   : > { %469 = vmatprep.mubr.f32.mxu0 %v2041_v7  ;;  %571 = vmatprep.mubr.f32.mxu1 %v2041_v7 }
  0x34   : > { %1671 = vmatmul.mubr.msk.f32.gmra.mrb[10].mxu0 %vm278_vm0, %v231_v23  ;;  %1688 = vmatmul.mubr.msk.f32.gmra.mrb[10].mxu1 %vm278_vm0, %v248_v24 }
  0x35   : > { %475 = vmatprep.mubr.f32.mxu0 %v2041_v7  ;;  %577 = vmatprep.mubr.f32.mxu1 %v2041_v7 }
  0x38   : > { %1672 = vmatmul.mubr.msk.f32.gmra.mrb[12].mxu0 %vm278_vm0, %v232_v25  ;;  %1689 = vmatmul.mubr.msk.f32.gmra.mrb[12].mxu1 %vm278_vm0, %v249_v26 }
  0x39   : > { %481 = vmatprep.mubr.f32.mxu0 %v2041_v7  ;;  %583 = vmatprep.mubr.f32.mxu1 %v2041_v7 }
  0x3c   : > { %1673 = vmatmul.mubr.msk.f32.gmra.mrb[14].mxu0 %vm278_vm0, %v233_v27  ;;  %1690 = vmatmul.mubr.msk.f32.gmra.mrb[14].mxu1 %vm278_vm0, %v250_v28 }
  0x3d   : > { %487 = vmatprep.mubr.f32.mxu0 %v2041_v7  ;;  %589 = vmatprep.mubr.f32.mxu1 %v2041_v7 }
  0x40   : > { %1674 = vmatmul.mubr.msk.f32.gmra.mrb[16].mxu0 %vm278_vm0, %v234_v29  ;;  %1691 = vmatmul.mubr.msk.f32.gmra.mrb[16].mxu1 %vm278_vm0, %v251_v30 }
  0x41   : > { %493 = vmatprep.mubr.f32.mxu0 %v2041_v7  ;;  %595 = vmatprep.mubr.f32.mxu1 %v2041_v7 }
  0x44   : > { %1675 = vmatmul.mubr.msk.f32.gmra.mrb[18].mxu0 %vm278_vm0, %v235_v31  ;;  %1692 = vmatmul.mubr.msk.f32.gmra.mrb[18].mxu1 %vm278_vm0, %v252_v32 }
  0x45   : > { %499 = vmatprep.mubr.f32.mxu0 %v2041_v7  ;;  %601 = vmatprep.mubr.f32.mxu1 %v2041_v7 }
  0x48   : > { %1676 = vmatmul.mubr.msk.f32.gmra.mrb[20].mxu0 %vm278_vm0, %v236_v33  ;;  %1693 = vmatmul.mubr.msk.f32.gmra.mrb[20].mxu1 %vm278_vm0, %v253_v34 }
  0x49   : > { %505 = vmatprep.mubr.f32.mxu0 %v2041_v7  ;;  %607 = vmatprep.mubr.f32.mxu1 %v2041_v7 }
  0x4c   : > { %1677 = vmatmul.mubr.msk.f32.gmra.mrb[22].mxu0 %vm278_vm0, %v237_v35  ;;  %1694 = vmatmul.mubr.msk.f32.gmra.mrb[22].mxu1 %vm278_vm0, %v254_v36 }
  0x4d   : > { %511 = vmatprep.mubr.f32.mxu0 %v2041_v7  ;;  %613 = vmatprep.mubr.f32.mxu1 %v2041_v7 }
  0x50   : > { %1678 = vmatmul.mubr.msk.f32.gmra.mrb[24].mxu0 %vm278_vm0, %v238_v37  ;;  %1695 = vmatmul.mubr.msk.f32.gmra.mrb[24].mxu1 %vm278_vm0, %v255_v38 }
  0x51   : > { %517 = vmatprep.mubr.f32.mxu0 %v2041_v7  ;;  %619 = vmatprep.mubr.f32.mxu1 %v2041_v7 }
  0x54   : > { %1679 = vmatmul.mubr.msk.f32.gmra.mrb[26].mxu0 %vm278_vm0, %v239_v39  ;;  %1696 = vmatmul.mubr.msk.f32.gmra.mrb[26].mxu1 %vm278_vm0, %v256_v40 }
  0x55   : > { %523 = vmatprep.mubr.f32.mxu0 %v2041_v7  ;;  %625 = vmatprep.mubr.f32.mxu1 %v2041_v7 }
  0x58   : > { %1680 = vmatmul.mubr.msk.f32.gmra.mrb[28].mxu0 %vm278_vm0, %v240_v41  ;;  %1697 = vmatmul.mubr.msk.f32.gmra.mrb[28].mxu1 %vm278_vm0, %v257_v42 }
  0x59   : > { %529 = vmatprep.mubr.f32.mxu0 %v2041_v7 }
  0x5c   : > { %1681 = vmatmul.mubr.msk.f32.gmra.mrb[30].mxu0 %vm278_vm0, %v241_v43 }
  0x5d   : > { %535 = vmatprep.mubr.f32.mxu0 %v2041_v7 }
  0x60   : > { %1682 = vmatmul.mubr.msk.f32.gmra.mrb[32].mxu0 %vm278_vm0, %v242_v44 }
  0xf3   : > { %v441_v50 = vpop.f32.mrb[0].mxu0  ;;  %v543_v51 = vpop.f32.mrb[0].mxu1 }
  0xf4   : > { %v442_v52 = vadd.f32 %v441_v50, %v2258_v49  ;;  %v544_v53 = vadd.f32 %v543_v51, %v2258_v49  ;;  %v2262_v54 = vpop.f32.mrb[1].mxu0  ;;  %v2264_v55 = vpop.f32.mrb[1].mxu1 }
  0xf6   : > { %v632_v56 = vrot.slane %v442_v52, 4  ;;  %v734_v57 = vrot.slane %v544_v53, 4 }
  0xf7   : > { %v447_v58 = vpop.f32.mrb[2].mxu0  ;;  %v549_v59 = vpop.f32.mrb[2].mxu1 }
  0xf8   : > { %v633_v60 = vmax.f32 %v442_v52, %v632_v56  ;;  %v735_v61 = vmax.f32 %v544_v53, %v734_v57  ;;  %v2267_v62 = vadd.f32 %v447_v58, %v2258_v49  ;;  %v2270_v63 = vadd.f32 %v549_v59, %v2258_v49  ;;  %v2272_v0 = vpop.f32.mrb[3].mxu0  ;;  %v2274_v1 = vpop.f32.mrb[3].mxu1 }
  0xfa   : > { %v634_v2 = vrot.slane %v633_v60, 2  ;;  %v736_v3 = vrot.slane %v735_v61, 2  ;;  %v638_v4 = vrot.slane %v2267_v62, 4  ;;  %v740_v5 = vrot.slane %v2270_v63, 4 }
  0xfb   : > { %v453_v6 = vpop.f32.mrb[4].mxu0  ;;  %v555_v7 = vpop.f32.mrb[4].mxu1 }
  0xfc   : > { %v635_v8 = vmax.f32 %v633_v60, %v634_v2  ;;  %v737_v9 = vmax.f32 %v735_v61, %v736_v3  ;;  %v639_v10 = vmax.f32 %v2267_v62, %v638_v4  ;;  %v741_v11 = vmax.f32 %v2270_v63, %v740_v5  ;;  %v2280_v12 = vpop.f32.mrb[5].mxu0  ;;  %v2282_v13 = vpop.f32.mrb[5].mxu1 }
  0xfd   : > { %v2285_v14 = vadd.f32 %v453_v6, %v2258_v49  ;;  %v2288_v15 = vadd.f32 %v555_v7, %v2258_v49 }
  0xfe   : > { %v636_v16 = vrot.slane %v635_v8, 1  ;;  %v738_v17 = vrot.slane %v737_v9, 1  ;;  %v640_v18 = vrot.slane %v639_v10, 2  ;;  %v742_v19 = vrot.slane %v741_v11, 2 }
  0xff   : > { %v644_v20 = vrot.slane %v2285_v14, 4  ;;  %v746_v21 = vrot.slane %v2288_v15, 4  ;;  %v459_v22 = vpop.f32.mrb[6].mxu0  ;;  %v561_v23 = vpop.f32.mrb[6].mxu1 }
 0x100   : > { %v637_v24 = vmax.f32 %v635_v8, %v636_v16  ;;  %v739_v25 = vmax.f32 %v737_v9, %v738_v17  ;;  %v641_v26 = vmax.f32 %v639_v10, %v640_v18  ;;  %v743_v27 = vmax.f32 %v741_v11, %v742_v19  ;;  %v2292_v28 = vpop.f32.mrb[7].mxu0  ;;  %v2294_v29 = vpop.f32.mrb[7].mxu1 }
 0x101   : > { %v645_v30 = vmax.f32 %v2285_v14, %v644_v20  ;;  %v747_v31 = vmax.f32 %v2288_v15, %v746_v21  ;;  %v2299_v32 = vadd.f32 %v459_v22, %v2258_v49  ;;  %v2302_v33 = vadd.f32 %v561_v23, %v2258_v49 }
 0x102   : > { %v824_v34 = vsub.f32 %v442_v52, %v637_v24  ;;  %v841_v35 = vsub.f32 %v544_v53, %v739_v25  ;;  %v642_v36 = vrot.slane %v641_v26, 1  ;;  %v744_v37 = vrot.slane %v743_v27, 1 }
 0x103   : > { %v646_v38 = vrot.slane %v645_v30, 2  ;;  %v748_v39 = vrot.slane %v747_v31, 2  ;;  %v650_v40 = vrot.slane %v2299_v32, 4  ;;  %v752_v41 = vrot.slane %v2302_v33, 4  ;;  %v465_v42 = vpop.f32.mrb[8].mxu0  ;;  %v567_v43 = vpop.f32.mrb[8].mxu1 }
 0x104   : > { %v856_v44 = vmul.f32 1.442695, %v824_v34  ;;  %v890_v45 = vmul.f32 1.442695, %v841_v35  ;;  %v643_v47 = vmax.f32 %v641_v26, %v642_v36  ;;  %v745_v50 = vmax.f32 %v743_v27, %v744_v37  ;;  %v2306_v51 = vpop.f32.mrb[9].mxu0  ;;  %v2308_v56 = vpop.f32.mrb[9].mxu1 }
 0x105   : > { %v647_v52 = vmax.f32 %v645_v30, %v646_v38  ;;  %v749_v53 = vmax.f32 %v747_v31, %v748_v39  ;;  %v651_v57 = vmax.f32 %v2299_v32, %v650_v40  ;;  %v753_v58 = vmax.f32 %v2302_v33, %v752_v41 }
 0x106   : > { %1849 = vpow2.f32 %v856_v44  ;;  %v825_v59 = vsub.f32 %v2267_v62, %v643_v47  ;;  %v842_v60 = vsub.f32 %v2270_v63, %v745_v50  ;;  %v2317_v17 = vadd.f32 %v465_v42, %v2258_v49 }
 0x107   : > { %1851 = vpow2.f32 %v890_v45  ;;  %v648_v61 = vrot.slane %v647_v52, 1  ;;  %v750_v2 = vrot.slane %v749_v53, 1  ;;  %v652_v3 = vrot.slane %v651_v57, 2  ;;  %v471_v4 = vpop.f32.mrb[10].mxu0  ;;  %v573_v5 = vpop.f32.mrb[10].mxu1 }
 0x108   : > { %v858_v6 = vmul.f32 1.442695, %v825_v59  ;;  %v892_v7 = vmul.f32 1.442695, %v842_v60  ;;  %v754_v8 = vrot.slane %v753_v58, 2  ;;  %v2314_v9 = vpop.f32.mrb[11].mxu0  ;;  %v2322_v18 = vadd.f32 %v567_v43, %v2258_v49 }
 0x109   : > { %v649_v10 = vmax.f32 %v647_v52, %v648_v61  ;;  %v751_v11 = vmax.f32 %v749_v53, %v750_v2  ;;  %v653_v16 = vmax.f32 %v651_v57, %v652_v3  ;;  %v2319_v62 = vpop.f32.mrb[11].mxu1  ;;  %v656_v25 = vrot.slane %v2317_v17, 4 }
 0x10a   : > { %1853 = vpow2.f32 %v858_v6  ;;  %v755_v63 = vmax.f32 %v753_v58, %v754_v8  ;;  %v758_v26 = vrot.slane %v2322_v18, 4  ;;  %v2342_v38 = vadd.f32 %v573_v5, %v2258_v49 }
 0x10b   : > { %1855 = vpow2.f32 %v892_v7  ;;  %v826_v19 = vsub.f32 %v2285_v14, %v649_v10  ;;  %v843_v20 = vsub.f32 %v2288_v15, %v751_v11  ;;  %v654_v21 = vrot.slane %v653_v16, 1  ;;  %v2326_v22 = vpop.f32.mrb[12].mxu0  ;;  %v2328_v23 = vpop.f32.mrb[12].mxu1 }
 0x10c   : > { %v756_v24 = vrot.slane %v755_v63, 1  ;;  %v2332_v27 = vpop.f32.mrb[13].mxu0  ;;  %v2334_v30 = vpop.f32.mrb[13].mxu1  ;;  %v2337_v14 = vadd.f32 %v471_v4, %v2258_v49  ;;  %v657_v36 = vmax.f32 %v2317_v17, %v656_v25  ;;  %v759_v37 = vmax.f32 %v2322_v18, %v758_v26 }
 0x10d   : > { %v860_v31 = vmul.f32 1.442695, %v826_v19  ;;  %v894_v34 = vmul.f32 1.442695, %v843_v20  ;;  %v655_v35 = vmax.f32 %v653_v16, %v654_v21  ;;  %v764_v60 = vrot.slane %v2342_v38, 4 }
 0x10e   : > { %v757_v15 = vmax.f32 %v755_v63, %v756_v24  ;;  %v662_v41 = vrot.slane %v2337_v14, 4  ;;  %v658_v47 = vrot.slane %v657_v36, 2  ;;  %v760_v50 = vrot.slane %v759_v37, 2 }
 0x10f   : > { %1857 = vpow2.f32 %v860_v31  ;;  %v827_v40 = vsub.f32 %v2299_v32, %v655_v35  ;;  %v2347_v42 = vpop.f32.mrb[14].mxu0  ;;  %v2349_v43 = vpop.f32.mrb[14].mxu1  ;;  %v765_v6 = vmax.f32 %v2342_v38, %v764_v60 }
 0x110   : > { %v2351_v44 = vpop.eup %1849  ;;  %1859 = vpow2.f32 %v894_v34  ;;  %v844_v45 = vsub.f32 %v2302_v33, %v757_v15  ;;  %v2354_v52 = vpop.f32.mrb[15].mxu0  ;;  %v663_v59 = vmax.f32 %v2337_v14, %v662_v41  ;;  %v659_v3 = vmax.f32 %v657_v36, %v658_v47 }
 0x111   : > { %v2356_v53 = vpop.f32.mrb[15].mxu1  ;;  %v2358_v57 = vpop.eup %1851  ;;  %v920_v32 = vrot.slane %v2351_v44, 4  ;;  %v862_v58 = vmul.f32 1.442695, %v827_v40  ;;  %v761_v33 = vmax.f32 %v759_v37, %v760_v50  ;;  %v766_v31 = vrot.slane %v765_v6, 2 }
 0x112   : > { %v1022_v61 = vrot.slane %v2358_v57, 4  ;;  %v896_v2 = vmul.f32 1.442695, %v844_v45  ;;  %v664_v5 = vrot.slane %v663_v59, 2  ;;  %v660_v16 = vrot.slane %v659_v3, 1 }
 0x113   : > { %v921_v4 = vadd.f32 %v2351_v44, %v920_v32  ;;  %1861 = vpow2.f32 %v862_v58  ;;  %v2366_v7 = vpop.f32.mrb[16].mxu0  ;;  %v2368_v8 = vpop.f32.mrb[16].mxu1  ;;  %v762_v63 = vrot.slane %v761_v33, 1  ;;  %v767_v45 = vmax.f32 %v765_v6, %v766_v31 }
 0x114   : > { %v2370_v10 = vpop.eup %1853  ;;  %v1023_v11 = vadd.f32 %v2358_v57, %v1022_v61  ;;  %1863 = vpow2.f32 %v896_v2  ;;  %v2373_v19 = vpop.f32.mrb[17].mxu0  ;;  %v665_v26 = vmax.f32 %v663_v59, %v664_v5  ;;  %v661_v15 = vmax.f32 %v659_v3, %v660_v16 }
 0x115   : > { %3061 = vst [vmem:[#allocation5_spill] sm:$0xff] %v2373_v19  ;;  %v2375_v20 = vpop.f32.mrb[17].mxu1  ;;  %v2377_v21 = vpop.eup %1855  ;;  %v922_v24 = vrot.slane %v921_v4, 2  ;;  %v926_v25 = vrot.slane %v2370_v10, 4  ;;  %v763_v36 = vmax.f32 %v761_v33, %v762_v63  ;;  %v768_v6 = vrot.slane %v767_v45, 1 }
 0x116   : > { %3062 = vst [vmem:[#allocation6_spill] sm:$0xff] %v2375_v20  ;;  %v1024_v34 = vrot.slane %v1023_v11, 2  ;;  %v1028_v35 = vrot.slane %v2377_v21, 4  ;;  %v666_v41 = vrot.slane %v665_v26, 1  ;;  %v828_v59 = vsub.f32 %v2317_v17, %v661_v15 }
 0x117   : > { %v923_v37 = vadd.f32 %v922_v24, %v921_v4  ;;  %v927_v40 = vadd.f32 %v2370_v10, %v926_v25  ;;  %v2382_v47 = vpop.f32.mrb[18].mxu0  ;;  %v2384_v50 = vpop.f32.mrb[18].mxu1  ;;  %v845_v60 = vsub.f32 %v2322_v18, %v763_v36  ;;  %v3068_v19 = vsub.s32 1, %v2249_v46 }
 0x118   : > { %v1025_v32 = vadd.f32 %v1024_v34, %v1023_v11  ;;  %v1029_v58 = vadd.f32 %v2377_v21, %v1028_v35  ;;  %v2389_v61 = vpop.f32.mrb[19].mxu0  ;;  %v2391_v2 = vpop.f32.mrb[19].mxu1  ;;  %v667_v5 = vmax.f32 %v665_v26, %v666_v41  ;;  %v864_v25 = vmul.f32 1.442695, %v828_v59 }
 0x119   : > { %3063 = vst [vmem:[#allocation7_spill] sm:$0xff] %v2389_v61  ;;  %3064 = vst [vmem:[#allocation8_spill] sm:$0xff] %v2391_v2  ;;  %v2393_v3 = vpop.eup %1857  ;;  %v924_v33 = vrot.slane %v923_v37, 1  ;;  %v928_v4 = vrot.slane %v927_v40, 2  ;;  %v898_v34 = vmul.f32 1.442695, %v845_v60 }
 0x11a   : > { %v2395_v16 = vpop.eup %1859  ;;  %v1026_v63 = vrot.slane %v1025_v32, 1  ;;  %v1030_v11 = vrot.slane %v1029_v58, 2  ;;  %v932_v24 = vrot.slane %v2393_v3, 4  ;;  %1865 = vpow2.f32 %v864_v25 }
 0x11b   : > { %v925_v17 = vadd.f32 %v924_v33, %v923_v37  ;;  %v929_v31 = vadd.f32 %v928_v4, %v927_v40  ;;  %v1034_v18 = vrot.slane %v2395_v16, 4  ;;  %v2399_v35 = vpop.f32.mrb[20].mxu0  ;;  %v2401_v15 = vpop.f32.mrb[20].mxu1  ;;  %v829_v59 = vsub.f32 %v2337_v14, %v667_v5 }
 0x11c   : > { %v1027_v36 = vadd.f32 %v1026_v63, %v1025_v32  ;;  %v1031_v39 = vadd.f32 %v1030_v11, %v1029_v58  ;;  %v933_v26 = vadd.f32 %v2393_v3, %v932_v24  ;;  %v2404_v41 = vpop.f32.mrb[21].mxu0  ;;  %v2406_v2 = vpop.f32.mrb[21].mxu1 }
 0x11d   : > { %3065 = vst [vmem:[#allocation9_spill] sm:$0xff] %v2404_v41  ;;  %3066 = vst [vmem:[#allocation10_spill] sm:$0xff] %v2406_v2  ;;  %v2408_v61 = vpop.eup %1861  ;;  %1867 = vrcp.f32 %v925_v17  ;;  %v930_v37 = vrot.slane %v929_v31, 1  ;;  %v1035_v40 = vadd.f32 %v2395_v16, %v1034_v18  ;;  %v866_v5 = vmul.f32 1.442695, %v829_v59 }
 0x11e   : > { %v2412_v60 = vpop.eup %1863  ;;  %1869 = vrcp.f32 %v1027_v36  ;;  %v1032_v32 = vrot.slane %v1031_v39, 1  ;;  %v934_v58 = vrot.slane %v933_v26, 2  ;;  %v938_v33 = vrot.slane %v2408_v61, 4 }
 0x11f   : > { %v931_v4 = vadd.f32 %v930_v37, %v929_v31  ;;  %v1036_v63 = vrot.slane %v1035_v40, 2  ;;  %v1040_v11 = vrot.slane %v2412_v60, 4  ;;  %1871 = vpow2.f32 %v898_v34  ;;  %v2416_v24 = vpop.f32.mrb[22].mxu0  ;;  %v2418_v25 = vpop.f32.mrb[22].mxu1 }
 0x120   : > { %v1033_v17 = vadd.f32 %v1032_v32, %v1031_v39  ;;  %v935_v18 = vadd.f32 %v934_v58, %v933_v26  ;;  %v939_v14 = vadd.f32 %v2408_v61, %v938_v33  ;;  %v2421_v2 = vpop.f32.mrb[23].mxu0  ;;  %v2423_v36 = vpop.f32.mrb[23].mxu1  ;;  %v769_v37 = vmax.f32 %v767_v45, %v768_v6 }
 0x121   : > { %3067 = vst [vmem:[#allocation11_spill] sm:$0xff] %v2423_v36  ;;  %1873 = vrcp.f32 %v931_v4  ;;  %v1037_v41 = vadd.f32 %v1036_v63, %v1035_v40  ;;  %v1041_v31 = vadd.f32 %v2412_v60, %v1040_v11  ;;  %v2429_v39 = vrot.slane %v2255_v48, %v3068_v19 }
 0x122   : > { %1875 = vrcp.f32 %v1033_v17  ;;  %v936_v34 = vrot.slane %v935_v18, 1  ;;  %v940_v20 = vrot.slane %v939_v14, 2  ;;  %v846_v40 = vsub.f32 %v2342_v38, %v769_v37 }
 0x123   : > { %v1038_v26 = vrot.slane %v1037_v41, 1  ;;  %v1042_v32 = vrot.slane %v1041_v31, 2  ;;  %v2431_v59 = vpop.f32.mrb[24].mxu0  ;;  %v2433_v58 = vpop.f32.mrb[24].mxu1  ;;  %1877 = vpow2.f32 %v866_v5  ;;  %v2442_v48 = vadd.f32 %v2326_v22, %v2258_v49 }
 0x124   : > { %v937_v33 = vadd.f32 %v936_v34, %v935_v18  ;;  %v941_v4 = vadd.f32 %v940_v20, %v939_v14  ;;  %v2436_v45 = vpop.f32.mrb[25].mxu0  ;;  %v2438_v6 = vpop.f32.mrb[25].mxu1  ;;  %v444_v20 = vadd.f32 %v2262_v54, %v2429_v39  ;;  %v900_v34 = vmul.f32 1.442695, %v846_v40 }
 0x125   : > { %3069 = vst [vmem:[#allocation12_spill] sm:$0xff] %v2436_v45  ;;  %3070 = vst [vmem:[#allocation13_spill] sm:$0xff] %v2438_v6  ;;  %v1039_v63 = vadd.f32 %v1038_v26, %v1037_v41  ;;  %v1043_v46 = vadd.f32 %v1042_v32, %v1041_v31  ;;  %v2444_v19 = vpop.eup %1865  ;;  %v546_v31 = vadd.f32 %v2264_v55, %v2429_v39  ;;  %v668_v45 = vrot.slane %v2442_v48, 4 }
 0x126   : > { %1879 = vrcp.f32 %v937_v33  ;;  %v942_v11 = vrot.slane %v941_v4, 1  ;;  %v944_v18 = vrot.slane %v2444_v19, 4 }
 0x127   : > { %v1868_v17 = vpop.eup %1867  ;;  %1881 = vrcp.f32 %v1039_v63  ;;  %v1044_v38 = vrot.slane %v1043_v46, 1  ;;  %v2449_v14 = vpop.f32.mrb[26].mxu0 }
 0x128   : > { %v2451_v41 = vpop.f32.mrb[26].mxu1  ;;  %v1870_v5 = vpop.eup %1869  ;;  %v1113_v22 = vmul.f32 %v1868_v17, %v2351_v44  ;;  %v943_v37 = vadd.f32 %v942_v11, %v941_v4  ;;  %v945_v6 = vadd.f32 %v2444_v19, %v944_v18  ;;  %v450_v44 = vadd.f32 %v2272_v0, %v2429_v39 }
 0x129   : > { %v2456_v26 = vpop.f32.mrb[27].mxu0  ;;  %v2458_v32 = vpop.f32.mrb[27].mxu1  ;;  %v1147_v33 = vmul.f32 %v1870_v5, %v2358_v57  ;;  %v1045_v63 = vadd.f32 %v1044_v38, %v1043_v46  ;;  %v552_v11 = vadd.f32 %v2274_v1, %v2429_v39  ;;  %v2480_v5 = vadd.f32 %v2328_v23, %v2258_v49 }
 0x12a   : > { %3071 = vst [vmem:[#allocation14_spill] sm:$0xff] %v2456_v26  ;;  %3072 = vst [vmem:[#allocation15_spill] sm:$0xff] %v2458_v32  ;;  %v2460_v54 = vpop.eup %1871  ;;  %v1176_v36 = vmul.f32 %v1113_v22, %v444_v20  ;;  %1883 = vrcp.f32 %v943_v37  ;;  %v946_v57 = vrot.slane %v945_v6, 2  ;;  %v669_v37 = vmax.f32 %v2442_v48, %v668_v45 }
 0x12b   : > { %v1046_v55 = vrot.slane %v2460_v54, 4  ;;  %v1874_v4 = vpop.eup %1873  ;;  %v2468_v40 = vmul.f32 %v1147_v33, %v546_v31  ;;  %1885 = vrcp.f32 %v1045_v63  ;;  %v2472_v46 = vpop.f32.mrb[28].mxu0  ;;  %v456_v23 = vadd.f32 %v2280_v12, %v2429_v39 }
 0x12c   : > { %v2474_v17 = vpop.f32.mrb[28].mxu1  ;;  %v1876_v38 = vpop.eup %1875  ;;  %v1208_v20 = vrot.slane %v1176_v36, 4  ;;  %v1115_v18 = vmul.f32 %v1874_v4, %v2370_v10  ;;  %v947_v31 = vadd.f32 %v946_v57, %v945_v6  ;;  %1887 = vpow2.f32 %v900_v34 }
 0x12d   : > { %3073 = vst [vmem:[#allocation16_spill] sm:$0xff] %v2468_v40  ;;  %v1047_v0 = vadd.f32 %v2460_v54, %v1046_v55  ;;  %v2482_v22 = vpop.f32.mrb[29].mxu0  ;;  %v1149_v1 = vmul.f32 %v1876_v38, %v2377_v21  ;;  %v2486_v33 = vpop.eup %1877  ;;  %v558_v4 = vadd.f32 %v2282_v13, %v2429_v39 }
 0x12e   : > { %3074 = vst [vmem:[#allocation17_spill] sm:$0xff] %v2482_v22  ;;  %v1209_v63 = vadd.f32 %v1208_v20, %v1176_v36  ;;  %v1177_v40 = vmul.f32 %v1115_v18, %v450_v44  ;;  %v2488_v10 = vpop.f32.mrb[29].mxu1  ;;  %v948_v21 = vrot.slane %v947_v31, 1  ;;  %v770_v36 = vrot.slane %v2480_v5, 4 }
 0x12f   : > { %v1048_v32 = vrot.slane %v1047_v0, 2  ;;  %3075 = vst [vmem:[#allocation18_spill] sm:$0xff] %v2488_v10  ;;  %v2490_v55 = vmul.f32 %v1149_v1, %v552_v11  ;;  %v2496_v6 = vpop.f32.mrb[30].mxu0  ;;  %v950_v12 = vrot.slane %v2486_v33, 4  ;;  %v670_v1 = vrot.slane %v669_v37, 2 }
 0x130   : > { %3077 = vst [vmem:[#allocation20_spill] sm:$0xff] %v2496_v6  ;;  %v1880_v34 = vpop.eup %1879  ;;  %v1210_v45 = vrot.slane %v1209_v63, 2  ;;  %v1214_v57 = vrot.slane %v1177_v40, 4  ;;  %v2499_v44 = vpop.f32.mrb[31].mxu0  ;;  %v949_v18 = vadd.f32 %v948_v21, %v947_v31 }
 0x131   : > { %3076 = vst [vmem:[#allocation19_spill] sm:$0xff] %v2490_v55  ;;  %v1049_v38 = vadd.f32 %v1048_v32, %v1047_v0  ;;  %3078 = vst [vmem:[#allocation21_spill] sm:$0xff] %v2499_v44  ;;  %v1882_v20 = vpop.eup %1881  ;;  %v1117_v11 = vmul.f32 %v1880_v34, %v2393_v3  ;;  %v462_v3 = vadd.f32 %v2292_v28, %v2429_v39 }
 0x132   : > { %v1211_v55 = vadd.f32 %v1210_v45, %v1209_v63  ;;  %v1215_v13 = vadd.f32 %v1214_v57, %v1177_v40  ;;  %v1151_v10 = vmul.f32 %v1882_v20, %v2395_v16  ;;  %1889 = vrcp.f32 %v949_v18 }
 0x133   : > { %v1050_v22 = vrot.slane %v1049_v38, 1  ;;  %v2504_v6 = vmul.f32 %v1117_v11, %v456_v23  ;;  %v2506_v32 = vpop.f32.mrb[32].mxu0  ;;  %v951_v16 = vadd.f32 %v2486_v33, %v950_v12  ;;  %v671_v23 = vmax.f32 %v669_v37, %v670_v1 }
 0x134   : > { %v1884_v0 = vpop.eup %1883  ;;  %v1216_v26 = vrot.slane %v1215_v13, 2  ;;  %v2508_v44 = vmul.f32 %v1151_v10, %v558_v4  ;;  %v2512_v21 = vpop.f32.mrb[33].mxu0  ;;  %v771_v34 = vmax.f32 %v2480_v5, %v770_v36  ;;  %v1212_v45 = vrot.slane %v1211_v55, 1 }
 0x135   : > { %v1051_v31 = vadd.f32 %v1050_v22, %v1049_v38  ;;  %v1886_v63 = vpop.eup %1885  ;;  %v1119_v40 = vmul.f32 %v1884_v0, %v2408_v61  ;;  %v564_v10 = vadd.f32 %v2294_v29, %v2429_v39  ;;  %v952_v61 = vrot.slane %v951_v16, 2 }
 0x136   : > { %v1217_v57 = vadd.f32 %v1216_v26, %v1215_v13  ;;  %v1153_v4 = vmul.f32 %v1886_v63, %v2412_v60  ;;  %v2520_v20 = vpop.eup %1887  ;;  %v672_v11 = vrot.slane %v671_v23, 1  ;;  %v772_v37 = vrot.slane %v771_v34, 2 }
 0x137   : > { %v1179_v28 = vmul.f32 %v1119_v40, %v462_v3  ;;  %1891 = vrcp.f32 %v1051_v31  ;;  %v1213_v18 = vadd.f32 %v1212_v45, %v1211_v55  ;;  %v1052_v26 = vrot.slane %v2520_v20, 4 }
 0x138   : > { %v1218_v22 = vrot.slane %v1217_v57, 1  ;;  %v2522_v38 = vmul.f32 %v1153_v4, %v564_v10  ;;  %v953_v12 = vadd.f32 %v952_v61, %v951_v16  ;;  %v673_v0 = vmax.f32 %v671_v23, %v672_v11 }
 0x139   : > { %v1053_v60 = vadd.f32 %v2520_v20, %v1052_v26  ;;  %v773_v3 = vmax.f32 %v771_v34, %v772_v37  ;;  %v468_v31 = vadd.f32 %v2306_v51, %v2429_v39  ;;  %v484_v23 = vadd.f32 %v2347_v42, %v2258_v49 }
 0x13a   : > { %v1219_v36 = vadd.f32 %v1218_v22, %v1217_v57  ;;  %v954_v13 = vrot.slane %v953_v12, 1  ;;  %v830_v45 = vsub.f32 %v2442_v48, %v673_v0  ;;  %v570_v51 = vadd.f32 %v2308_v56, %v2429_v39 }
 0x13b   : > { %v1054_v40 = vrot.slane %v1053_v60, 2  ;;  %v774_v4 = vrot.slane %v773_v3, 1  ;;  %v674_v48 = vrot.slane %v484_v23, 4  ;;  %v1220_v37 = vrot.slane %v2504_v6, 4 }
 0x13c   : > { %v2526_v29 = vsel %vm1455_vm1, %v1219_v36, %v1213_v18  ;;  %v1890_v1 = vpop.eup %1889  ;;  %v955_v55 = vadd.f32 %v954_v13, %v953_v12  ;;  %v868_v10 = vmul.f32 1.442695, %v830_v45  ;;  %v586_v26 = vadd.f32 %v2349_v43, %v2258_v49 }
 0x13d   : > { %v1121_v63 = vmul.f32 %v1890_v1, %v2444_v19  ;;  %v1055_v16 = vadd.f32 %v1054_v40, %v1053_v60  ;;  %v775_v34 = vmax.f32 %v773_v3, %v774_v4  ;;  %v675_v42 = vmax.f32 %v484_v23, %v674_v48 }
 0x13e   : > { %1893 = vrcp.f32 %v955_v55  ;;  %v776_v60 = vrot.slane %v586_v26, 4  ;;  %v2548_v56 = vadd.f32 %v2366_v7, %v2258_v49  ;;  %v2552_v13 = vadd.f32 %v2368_v8, %v2258_v49 }
 0x13f   : > { %v2533_v57 = vmul.f32 %v1121_v63, %v468_v31  ;;  %v1056_v61 = vrot.slane %v1055_v16, 1  ;;  %1895 = vpow2.f32 %v868_v10  ;;  %v847_v36 = vsub.f32 %v2480_v5, %v775_v34 }
 0x140   : > { %v676_v1 = vrot.slane %v675_v42, 2  ;;  %v1221_v0 = vadd.f32 %v1220_v37, %v2504_v6  ;;  %v777_v5 = vmax.f32 %v586_v26, %v776_v60  ;;  %v680_v43 = vrot.slane %v2548_v56, 4 }
 0x141   : > { %v1892_v22 = vpop.eup %1891  ;;  %v1057_v11 = vadd.f32 %v1056_v61, %v1055_v16  ;;  %v902_v12 = vmul.f32 1.442695, %v847_v36  ;;  %v782_v31 = vrot.slane %v2552_v13, 4  ;;  %v474_v7 = vadd.f32 %v2314_v9, %v2429_v39 }
 0x142   : > { %v1155_v19 = vmul.f32 %v1892_v22, %v2460_v54  ;;  %v1226_v54 = vrot.slane %v1179_v28, 4  ;;  %v677_v3 = vmax.f32 %v675_v42, %v676_v1  ;;  %v778_v40 = vrot.slane %v777_v5, 2 }
 0x143   : > { %1897 = vrcp.f32 %v1057_v11  ;;  %v681_v55 = vmax.f32 %v2548_v56, %v680_v43  ;;  %v2562_v8 = vadd.f32 %v2382_v47, %v2258_v49  ;;  %v783_v10 = vmax.f32 %v2552_v13, %v782_v31 }
 0x144   : > { %v2541_v18 = vmul.f32 %v1155_v19, %v570_v51  ;;  %1899 = vpow2.f32 %v902_v12  ;;  %v1227_v45 = vadd.f32 %v1226_v54, %v1179_v28  ;;  %v678_v16 = vrot.slane %v677_v3, 1 }
 0x145   : > { %v1222_v22 = vrot.slane %v1221_v0, 2  ;;  %v779_v61 = vmax.f32 %v777_v5, %v778_v40  ;;  %v682_v51 = vrot.slane %v681_v55, 2  ;;  %v686_v9 = vrot.slane %v2562_v8, 4 }
 0x146   : > { %v679_v11 = vmax.f32 %v677_v3, %v678_v16  ;;  %v784_v48 = vrot.slane %v783_v10, 2  ;;  %v1228_v36 = vrot.slane %v1227_v45, 2  ;;  %v576_v54 = vadd.f32 %v2319_v62, %v2429_v39 }
 0x147   : > { %v780_v47 = vrot.slane %v779_v61, 1  ;;  %v683_v37 = vmax.f32 %v681_v55, %v682_v51  ;;  %v687_v28 = vmax.f32 %v2562_v8, %v686_v9  ;;  %v1223_v31 = vadd.f32 %v1222_v22, %v1221_v0 }
 0x148   : > { %v1894_v63 = vpop.eup %1893  ;;  %v831_v12 = vsub.f32 %v484_v23, %v679_v11  ;;  %v785_v60 = vmax.f32 %v783_v10, %v784_v48  ;;  %v1229_v23 = vadd.f32 %v1228_v36, %v1227_v45  ;;  %v1232_v62 = vrot.slane %v2533_v57, 4 }
 0x149   : > { %v1123_v6 = vmul.f32 %v1894_v63, %v2486_v33  ;;  %v2566_v4 = vpop.eup %1895  ;;  %v781_v5 = vmax.f32 %v779_v61, %v780_v47  ;;  %v684_v43 = vrot.slane %v683_v37, 1  ;;  %v688_v51 = vrot.slane %v687_v28, 2 }
 0x14a   : > { %v956_v34 = vrot.slane %v2566_v4, 4  ;;  %v870_v63 = vmul.f32 1.442695, %v831_v12  ;;  %v1224_v47 = vrot.slane %v1223_v31, 1  ;;  %v1233_v12 = vadd.f32 %v1232_v62, %v2533_v57 }
 0x14b   : > { %v1181_v19 = vmul.f32 %v1123_v6, %v474_v7  ;;  %v786_v7 = vrot.slane %v785_v60, 1  ;;  %v848_v6 = vsub.f32 %v586_v26, %v781_v5  ;;  %v685_v16 = vmax.f32 %v683_v37, %v684_v43 }
 0x14c   : > { %v957_v42 = vadd.f32 %v2566_v4, %v956_v34  ;;  %1901 = vpow2.f32 %v870_v63  ;;  %v689_v48 = vmax.f32 %v687_v28, %v688_v51  ;;  %v1230_v37 = vrot.slane %v1229_v23, 1 }
 0x14d   : > { %v1898_v33 = vpop.eup %1897  ;;  %v832_v0 = vsub.f32 %v2548_v56, %v685_v16  ;;  %v787_v22 = vmax.f32 %v785_v60, %v786_v7  ;;  %v1238_v61 = vrot.slane %v1181_v19, 4  ;;  %v2587_v56 = vadd.f32 %v2384_v50, %v2258_v49 }
 0x14e   : > { %v1157_v1 = vmul.f32 %v1898_v33, %v2520_v20  ;;  %v958_v3 = vrot.slane %v957_v42, 2  ;;  %v2575_v40 = vpop.eup %1899  ;;  %v904_v20 = vmul.f32 1.442695, %v848_v6  ;;  %v480_v5 = vadd.f32 %v2332_v27, %v2429_v39 }
 0x14f   : > { %v1058_v9 = vrot.slane %v2575_v40, 4  ;;  %v872_v26 = vmul.f32 1.442695, %v832_v0  ;;  %v849_v45 = vsub.f32 %v2552_v13, %v787_v22  ;;  %v1239_v60 = vadd.f32 %v1238_v61, %v1181_v19 }
 0x150   : > { %v2577_v55 = vmul.f32 %v1157_v1, %v576_v54  ;;  %v959_v10 = vadd.f32 %v958_v3, %v957_v42  ;;  %1903 = vpow2.f32 %v904_v20  ;;  %v690_v42 = vrot.slane %v689_v48, 1 }
 0x151   : > { %v1059_v11 = vadd.f32 %v2575_v40, %v1058_v9  ;;  %1905 = vpow2.f32 %v872_v26  ;;  %v906_v54 = vmul.f32 1.442695, %v849_v45  ;;  %v2593_v13 = vadd.f32 %v2334_v30, %v2429_v39 }
 0x152   : > { %v960_v34 = vrot.slane %v959_v10, 1  ;;  %v691_v1 = vmax.f32 %v689_v48, %v690_v42  ;;  %v788_v57 = vrot.slane %v2587_v56, 4  ;;  %v2596_v43 = vadd.f32 %v1224_v47, %v1223_v31 }
 0x153   : > { %v1060_v36 = vrot.slane %v1059_v11, 2  ;;  %v2601_v19 = vadd.f32 %v2399_v35, %v2258_v49  ;;  %v2603_v63 = vadd.f32 %v1230_v37, %v1229_v23  ;;  %v1234_v7 = vrot.slane %v1233_v12, 2 }
 0x154   : > { %v961_v33 = vadd.f32 %v960_v34, %v959_v10  ;;  %v833_v50 = vsub.f32 %v2562_v8, %v691_v1  ;;  %v789_v27 = vmax.f32 %v2587_v56, %v788_v57  ;;  %v2608_v30 = vadd.f32 %v2401_v15, %v2258_v49 }
 0x155   : > { %v1061_v28 = vadd.f32 %v1060_v36, %v1059_v11  ;;  %v1240_v31 = vrot.slane %v1239_v60, 2  ;;  %v692_v8 = vrot.slane %v2601_v19, 4  ;;  %v2615_v35 = vadd.f32 %v2354_v52, %v2429_v39 }
 0x156   : > { %1907 = vrcp.f32 %v961_v33  ;;  %v2610_v6 = vpop.eup %1901  ;;  %v874_v51 = vmul.f32 1.442695, %v833_v50  ;;  %v790_v10 = vrot.slane %v789_v27, 2  ;;  %v794_v9 = vrot.slane %v2608_v30, 4 }
 0x157   : > { %1909 = vpow2.f32 %v906_v54  ;;  %v1062_v3 = vrot.slane %v1061_v28, 1  ;;  %v962_v23 = vrot.slane %v2610_v6, 4  ;;  %v2621_v15 = vadd.f32 %v2356_v53, %v2429_v39 }
 0x158   : > { %v693_v62 = vmax.f32 %v2601_v19, %v692_v8  ;;  %v2626_v20 = vadd.f32 %v2416_v24, %v2258_v49  ;;  %v791_v22 = vmax.f32 %v789_v27, %v790_v10  ;;  %v795_v61 = vmax.f32 %v2608_v30, %v794_v9 }
 0x159   : > { %v1063_v16 = vadd.f32 %v1062_v3, %v1061_v28  ;;  %v963_v52 = vadd.f32 %v2610_v6, %v962_v23  ;;  %v2632_v34 = vadd.f32 %v1234_v7, %v1233_v12  ;;  %v2634_v11 = vadd.f32 %v1240_v31, %v1239_v60 }
 0x15a   : > { %v2628_v0 = vpop.eup %1903  ;;  %v694_v48 = vrot.slane %v693_v62, 2  ;;  %v792_v24 = vrot.slane %v791_v22, 1  ;;  %v796_v45 = vrot.slane %v795_v61, 2  ;;  %v2641_v37 = vadd.f32 %v2418_v25, %v2258_v49 }
 0x15b   : > { %1911 = vrcp.f32 %v1063_v16  ;;  %v1064_v53 = vrot.slane %v2628_v0, 4  ;;  %v2637_v47 = vpop.eup %1905  ;;  %v964_v26 = vrot.slane %v963_v52, 2  ;;  %v698_v54 = vrot.slane %v2626_v20, 4 }
 0x15c   : > { %1913 = vpow2.f32 %v874_v51  ;;  %v968_v42 = vrot.slane %v2637_v47, 4  ;;  %v695_v12 = vmax.f32 %v693_v62, %v694_v48  ;;  %v793_v57 = vmax.f32 %v791_v22, %v792_v24 }
 0x15d   : > { %v1065_v36 = vadd.f32 %v2628_v0, %v1064_v53  ;;  %v965_v1 = vadd.f32 %v964_v26, %v963_v52  ;;  %v797_v3 = vmax.f32 %v795_v61, %v796_v45  ;;  %v800_v61 = vrot.slane %v2641_v37, 4 }
 0x15e   : > { %v969_v7 = vadd.f32 %v2637_v47, %v968_v42  ;;  %v696_v27 = vrot.slane %v695_v12, 1  ;;  %v850_v51 = vsub.f32 %v2587_v56, %v793_v57 }
 0x15f   : > { %v1066_v50 = vrot.slane %v1065_v36, 2  ;;  %v966_v16 = vrot.slane %v965_v1, 1  ;;  %v798_v8 = vrot.slane %v797_v3, 1 }
 0x160   : > { %v1908_v33 = vpop.eup %1907  ;;  %v970_v10 = vrot.slane %v969_v7, 2  ;;  %v697_v62 = vmax.f32 %v695_v12, %v696_v27  ;;  %v908_v52 = vmul.f32 1.442695, %v850_v51  ;;  %v801_v51 = vmax.f32 %v2641_v37, %v800_v61 }
 0x161   : > { %v2646_v60 = vpop.eup %1909  ;;  %v1125_v28 = vmul.f32 %v1908_v33, %v2566_v4  ;;  %v1067_v23 = vadd.f32 %v1066_v50, %v1065_v36  ;;  %v967_v4 = vadd.f32 %v966_v16, %v965_v1  ;;  %v799_v22 = vmax.f32 %v797_v3, %v798_v8 }
 0x162   : > { %v1070_v25 = vrot.slane %v2646_v60, 4  ;;  %v971_v26 = vadd.f32 %v970_v10, %v969_v7  ;;  %v699_v36 = vmax.f32 %v2626_v20, %v698_v54  ;;  %v1236_v1 = vrot.slane %v2632_v34, 1 }
 0x163   : > { %v1182_v31 = vmul.f32 %v1125_v28, %v480_v5  ;;  %v1068_v48 = vrot.slane %v1067_v23, 1  ;;  %v834_v5 = vsub.f32 %v2601_v19, %v697_v62  ;;  %1915 = vrcp.f32 %v967_v4 }
 0x164   : > { %v1071_v9 = vadd.f32 %v2646_v60, %v1070_v25  ;;  %v851_v33 = vsub.f32 %v2608_v30, %v799_v22  ;;  %v972_v12 = vrot.slane %v971_v26, 1  ;;  %1917 = vpow2.f32 %v908_v52 }
 0x165   : > { %v1912_v53 = vpop.eup %1911  ;;  %v1069_v42 = vadd.f32 %v1068_v48, %v1067_v23  ;;  %v876_v3 = vmul.f32 1.442695, %v834_v5  ;;  %v1242_v30 = vrot.slane %v2634_v11, 1  ;;  %v1244_v25 = vrot.slane %v1182_v31, 4  ;;  %v3080_v23 = vld [vmem:[#allocation6_spill] sm:$0xff] }
 0x166   : > { %v1072_v24 = vrot.slane %v1071_v9, 2  ;;  %v2655_v45 = vpop.eup %1913  ;;  %v1159_v56 = vmul.f32 %v1912_v53, %v2575_v40  ;;  %v973_v50 = vadd.f32 %v972_v12, %v971_v26  ;;  %v910_v7 = vmul.f32 1.442695, %v851_v33  ;;  %v3081_v26 = vld [vmem:[#allocation7_spill] sm:$0xff] }
 0x167   : > { %v974_v19 = vrot.slane %v2655_v45, 4  ;;  %1919 = vrcp.f32 %v1069_v42  ;;  %v700_v16 = vrot.slane %v699_v36, 2  ;;  %v2672_v10 = vadd.f32 %v3080_v23, %v2429_v39  ;;  %v3083_v42 = vld [vmem:[#allocation9_spill] sm:$0xff] }
 0x168   : > { %v1073_v28 = vadd.f32 %v1072_v24, %v1071_v9  ;;  %v2662_v57 = vmul.f32 %v1159_v56, %v2593_v13  ;;  %1921 = vpow2.f32 %v876_v3  ;;  %v3079_v13 = vld [vmem:[#allocation5_spill] sm:$0xff]  ;;  %v2675_v62 = vadd.f32 %v1236_v1, %v2632_v34 }
 0x169   : > { %v975_v54 = vadd.f32 %v2655_v45, %v974_v19  ;;  %1923 = vrcp.f32 %v973_v50  ;;  %v492_v8 = vadd.f32 %v3079_v13, %v2429_v39  ;;  %v701_v4 = vmax.f32 %v699_v36, %v700_v16  ;;  %v3084_v19 = vld [vmem:[#allocation10_spill] sm:$0xff] }
 0x16a   : > { %v1074_v40 = vrot.slane %v1073_v28, 1  ;;  %1925 = vpow2.f32 %v910_v7  ;;  %v802_v52 = vrot.slane %v801_v51, 2  ;;  %v2678_v22 = vadd.f32 %v1242_v30, %v2634_v11  ;;  %v3082_v11 = vld [vmem:[#allocation8_spill] sm:$0xff] }
 0x16b   : > { %v976_v9 = vrot.slane %v975_v54, 2  ;;  %v1245_v53 = vadd.f32 %v1244_v25, %v1182_v31  ;;  %v2682_v48 = vadd.f32 %v2431_v59, %v2258_v49  ;;  %v2686_v24 = vadd.f32 %v3081_v26, %v2429_v39 }
 0x16c   : > { %v1075_v27 = vadd.f32 %v1074_v40, %v1073_v28  ;;  %v702_v5 = vrot.slane %v701_v4, 1  ;;  %v803_v56 = vmax.f32 %v801_v51, %v802_v52  ;;  %v2690_v34 = vadd.f32 %v2433_v58, %v2258_v49 }
 0x16d   : > { %v977_v61 = vadd.f32 %v976_v9, %v975_v54  ;;  %v1916_v33 = vpop.eup %1915  ;;  %v2694_v31 = vadd.f32 %v3082_v11, %v2429_v39  ;;  %v2698_v59 = vadd.f32 %v3083_v42, %v2429_v39  ;;  %v704_v12 = vrot.slane %v2682_v48, 4 }
 0x16e   : > { %1927 = vrcp.f32 %v1075_v27  ;;  %v2701_v28 = vpop.eup %1917  ;;  %v1127_v1 = vmul.f32 %v1916_v33, %v2610_v6  ;;  %v2706_v58 = vadd.f32 %v3084_v19, %v2429_v39  ;;  %v703_v3 = vmax.f32 %v701_v4, %v702_v5 }
 0x16f   : > { %v978_v36 = vrot.slane %v977_v61, 1  ;;  %v804_v50 = vrot.slane %v803_v56, 1  ;;  %v1246_v40 = vrot.slane %v1245_v53, 2  ;;  %v1076_v30 = vrot.slane %v2701_v28, 4 }
 0x170   : > { %v705_v25 = vmax.f32 %v2682_v48, %v704_v12  ;;  %v2711_v27 = vmul.f32 %v1127_v1, %v2615_v35  ;;  %v835_v16 = vsub.f32 %v2626_v20, %v703_v3  ;;  %v806_v6 = vrot.slane %v2690_v34, 4 }
 0x171   : > { %v979_v7 = vadd.f32 %v978_v36, %v977_v61  ;;  %v1920_v54 = vpop.eup %1919  ;;  %v805_v51 = vmax.f32 %v803_v56, %v804_v50  ;;  %v1077_v9 = vadd.f32 %v2701_v28, %v1076_v30  ;;  %v2721_v4 = vadd.f32 %v2421_v2, %v2429_v39 }
 0x172   : > { %v2715_v13 = vpop.eup %1921  ;;  %v1161_v23 = vmul.f32 %v1920_v54, %v2628_v0  ;;  %v878_v61 = vmul.f32 1.442695, %v835_v16  ;;  %v706_v26 = vrot.slane %v705_v25, 2  ;;  %v2727_v56 = vadd.f32 %v1246_v40, %v1245_v53 }
 0x173   : > { %1929 = vrcp.f32 %v979_v7  ;;  %v1924_v52 = vpop.eup %1923  ;;  %v980_v35 = vrot.slane %v2715_v13, 4  ;;  %v852_v20 = vsub.f32 %v2641_v37, %v805_v51  ;;  %v1078_v36 = vrot.slane %v1077_v9, 2 }
 0x174   : > { %v2725_v5 = vpop.eup %1925  ;;  %v1200_v0 = vmul.f32 %v1161_v23, %v2621_v15  ;;  %v1129_v33 = vmul.f32 %v1924_v52, %v2637_v47  ;;  %1931 = vpow2.f32 %v878_v61  ;;  %v807_v12 = vmax.f32 %v2690_v34, %v806_v6 }
 0x175   : > { %v981_v2 = vadd.f32 %v2715_v13, %v980_v35  ;;  %v1082_v42 = vrot.slane %v2725_v5, 4  ;;  %v1079_v3 = vadd.f32 %v1078_v36, %v1077_v9  ;;  %v912_v15 = vmul.f32 1.442695, %v852_v20 }
 0x176   : > { %v1352_v1 = vrot.slane %v1200_v0, 4  ;;  %v1184_v37 = vmul.f32 %v1129_v33, %v492_v8  ;;  %v707_v40 = vmax.f32 %v705_v25, %v706_v26  ;;  %v1248_v16 = vrot.slane %v2727_v56, 1 }
 0x177   : > { %v982_v53 = vrot.slane %v981_v2, 2  ;;  %v1083_v50 = vadd.f32 %v2725_v5, %v1082_v42  ;;  %v1080_v54 = vrot.slane %v1079_v3, 1  ;;  %1933 = vpow2.f32 %v912_v15 }
 0x178   : > { %v1928_v11 = vpop.eup %1927  ;;  %v1353_v47 = vadd.f32 %v1352_v1, %v1200_v0  ;;  %v1256_v7 = vrot.slane %v1184_v37, 4  ;;  %v708_v61 = vrot.slane %v707_v40, 1  ;;  %v808_v33 = vrot.slane %v807_v12, 2 }
 0x179   : > { %v1163_v19 = vmul.f32 %v1928_v11, %v2646_v60  ;;  %v983_v51 = vadd.f32 %v982_v53, %v981_v2  ;;  %v1084_v23 = vrot.slane %v1083_v50, 2  ;;  %v1081_v60 = vadd.f32 %v1080_v54, %v1079_v3 }
 0x17a   : > { %v1354_v6 = vrot.slane %v1353_v47, 2  ;;  %v1257_v8 = vadd.f32 %v1256_v7, %v1184_v37  ;;  %v709_v2 = vmax.f32 %v707_v40, %v708_v61  ;;  %v2741_v37 = vadd.f32 %v2449_v14, %v2258_v49 }
 0x17b   : > { %v1201_v30 = vmul.f32 %v1163_v19, %v2672_v10  ;;  %v984_v9 = vrot.slane %v983_v51, 1  ;;  %v1085_v35 = vadd.f32 %v1084_v23, %v1083_v50  ;;  %1935 = vrcp.f32 %v1081_v60 }
 0x17c   : > { %v1355_v25 = vadd.f32 %v1354_v6, %v1353_v47  ;;  %v1258_v26 = vrot.slane %v1257_v8, 2  ;;  %v809_v19 = vmax.f32 %v807_v12, %v808_v33  ;;  %v836_v15 = vsub.f32 %v2682_v48, %v709_v2 }
 0x17d   : > { %v1358_v52 = vrot.slane %v1201_v30, 4  ;;  %v1930_v20 = vpop.eup %1929  ;;  %v985_v36 = vadd.f32 %v984_v9, %v983_v51  ;;  %v1086_v11 = vrot.slane %v1085_v35, 1 }
 0x17e   : > { %v1131_v10 = vmul.f32 %v1930_v20, %v2655_v45  ;;  %v1356_v42 = vrot.slane %v1355_v25, 1  ;;  %v2743_v3 = vpop.eup %1931  ;;  %v1250_v45 = vrot.slane %v2711_v27, 4  ;;  %v1259_v47 = vadd.f32 %v1258_v26, %v1257_v8 }
 0x17f   : > { %v1359_v0 = vadd.f32 %v1358_v52, %v1201_v30  ;;  %1937 = vrcp.f32 %v985_v36  ;;  %v1087_v50 = vadd.f32 %v1086_v11, %v1085_v35  ;;  %v986_v40 = vrot.slane %v2743_v3, 4 }
 0x180   : > { %v1185_v53 = vmul.f32 %v1131_v10, %v2686_v24  ;;  %v880_v12 = vmul.f32 1.442695, %v836_v15  ;;  %v810_v54 = vrot.slane %v809_v19, 1  ;;  %v1357_v14 = vadd.f32 %v1356_v42, %v1355_v25 }
 0x181   : > { %v1360_v1 = vrot.slane %v1359_v0, 2  ;;  %1939 = vrcp.f32 %v1087_v50  ;;  %v987_v23 = vadd.f32 %v2743_v3, %v986_v40  ;;  %v710_v24 = vrot.slane %v2741_v37, 4  ;;  %v2751_v6 = vpop.eup %1933 }
 0x182   : > { %v1262_v30 = vrot.slane %v1185_v53, 4  ;;  %1941 = vpow2.f32 %v880_v12  ;;  %v811_v48 = vmax.f32 %v809_v19, %v810_v54  ;;  %v2755_v8 = vadd.f32 %v2451_v41, %v2258_v49 }
 0x183   : > { %v1361_v7 = vadd.f32 %v1360_v1, %v1359_v0  ;;  %v988_v9 = vrot.slane %v987_v23, 2  ;;  %v1088_v35 = vrot.slane %v2751_v6, 4  ;;  %v711_v61 = vmax.f32 %v2741_v37, %v710_v24 }
 0x184   : > { %v1263_v52 = vadd.f32 %v1262_v30, %v1185_v53  ;;  %v1260_v33 = vrot.slane %v1259_v47, 1  ;;  %v853_v25 = vsub.f32 %v2690_v34, %v811_v48  ;;  %v812_v26 = vrot.slane %v2755_v8, 4 }
 0x185   : > { %v1362_v51 = vrot.slane %v1361_v7, 1  ;;  %v1936_v0 = vpop.eup %1935  ;;  %v989_v36 = vadd.f32 %v988_v9, %v987_v23  ;;  %v1089_v41 = vadd.f32 %v2751_v6, %v1088_v35  ;;  %v712_v11 = vrot.slane %v711_v61, 2 }
 0x186   : > { %v1264_v20 = vrot.slane %v1263_v52, 2  ;;  %v1165_v42 = vmul.f32 %v1936_v0, %v2701_v28  ;;  %v914_v1 = vmul.f32 1.442695, %v853_v25  ;;  %v813_v19 = vmax.f32 %v2755_v8, %v812_v26  ;;  %v3085_v26 = vld [vmem:[#allocation11_spill] sm:$0xff] }
 0x187   : > { %v1363_v60 = vadd.f32 %v1362_v51, %v1361_v7  ;;  %v1251_v53 = vadd.f32 %v1250_v45, %v2711_v27  ;;  %v990_v50 = vrot.slane %v989_v36, 1  ;;  %v1090_v34 = vrot.slane %v1089_v41, 2 }
 0x188   : > { %v1265_v2 = vadd.f32 %v1264_v20, %v1263_v52  ;;  %v713_v15 = vmax.f32 %v711_v61, %v712_v11  ;;  %v1202_v30 = vmul.f32 %v1165_v42, %v2694_v31  ;;  %1943 = vpow2.f32 %v914_v1  ;;  %v3086_v11 = vld [vmem:[#allocation12_spill] sm:$0xff] }
 0x189   : > { %v2762_v10 = vsel %vm1455_vm1, %v1363_v60, %v1357_v14  ;;  %v1938_v7 = vpop.eup %1937  ;;  %v814_v12 = vrot.slane %v813_v19, 2  ;;  %v991_v14 = vadd.f32 %v990_v50, %v989_v36  ;;  %v1091_v51 = vadd.f32 %v1090_v34, %v1089_v41 }
 0x18a   : > { %v1266_v40 = vrot.slane %v1265_v2, 1  ;;  %v1133_v54 = vmul.f32 %v1938_v7, %v2715_v13  ;;  %v714_v23 = vrot.slane %v713_v15, 1  ;;  %v1261_v24 = vadd.f32 %v1260_v33, %v1259_v47 }
 0x18b   : > { %v1940_v28 = vpop.eup %1939  ;;  %v815_v48 = vmax.f32 %v813_v19, %v814_v12  ;;  %v2772_v27 = vadd.f32 %v2472_v46, %v2258_v49  ;;  %1945 = vrcp.f32 %v991_v14  ;;  %v1092_v31 = vrot.slane %v1091_v51, 1  ;;  %v3087_v12 = vld [vmem:[#allocation13_spill] sm:$0xff] }
 0x18c   : > { %v1267_v52 = vadd.f32 %v1266_v40, %v1265_v2  ;;  %v1186_v45 = vmul.f32 %v1133_v54, %v2698_v59  ;;  %v1167_v60 = vmul.f32 %v1940_v28, %v2725_v5  ;;  %v2776_v9 = vpop.eup %1941  ;;  %v1364_v35 = vrot.slane %v1202_v30, 4 }
 0x18d   : > { %v715_v61 = vmax.f32 %v713_v15, %v714_v23  ;;  %v816_v20 = vrot.slane %v815_v48, 1  ;;  %v1093_v25 = vadd.f32 %v1092_v31, %v1091_v51  ;;  %v992_v46 = vrot.slane %v2776_v9, 4 }
 0x18e   : > { %v1469_v13 = vsel %vm1455_vm1, %v1267_v52, %v1261_v24  ;;  %v1268_v47 = vrot.slane %v1186_v45, 4  ;;  %v1203_v33 = vmul.f32 %v1167_v60, %v2706_v58  ;;  %v612_v59 = vadd.f32 %v3085_v26, %v2429_v39 }
 0x18f   : > { %v837_v5 = vsub.f32 %v2741_v37, %v715_v61  ;;  %v817_v0 = vmax.f32 %v815_v48, %v816_v20  ;;  %v716_v36 = vrot.slane %v2772_v27, 4  ;;  %1947 = vrcp.f32 %v1093_v25  ;;  %v3088_v20 = vld [vmem:[#allocation14_spill] sm:$0xff] }
 0x190   : > { %v1269_v41 = vadd.f32 %v1268_v47, %v1186_v45  ;;  %v2787_v2 = vadd.f32 %v3086_v11, %v2429_v39  ;;  %v993_v42 = vadd.f32 %v2776_v9, %v992_v46  ;;  %v1252_v58 = vrot.slane %v1251_v53, 2 }
 0x191   : > { %v882_v1 = vmul.f32 1.442695, %v837_v5  ;;  %v854_v19 = vsub.f32 %v2755_v8, %v817_v0  ;;  %v717_v50 = vmax.f32 %v2772_v27, %v716_v36  ;;  %v1365_v34 = vadd.f32 %v1364_v35, %v1202_v30 }
 0x192   : > { %v1270_v37 = vrot.slane %v1269_v41, 2  ;;  %v994_v15 = vrot.slane %v993_v42, 2  ;;  %v2794_v7 = vadd.f32 %v2474_v17, %v2258_v49  ;;  %v2796_v40 = vpop.eup %1943  ;;  %v2800_v54 = vadd.f32 %v3087_v12, %v2429_v39 }
 0x193   : > { %1949 = vpow2.f32 %v882_v1  ;;  %v916_v14 = vmul.f32 1.442695, %v854_v19  ;;  %v718_v51 = vrot.slane %v717_v50, 2  ;;  %v1370_v8 = vrot.slane %v1203_v33, 4 }
 0x194   : > { %v1271_v23 = vadd.f32 %v1270_v37, %v1269_v41  ;;  %v995_v28 = vadd.f32 %v994_v15, %v993_v42  ;;  %v1094_v30 = vrot.slane %v2796_v40, 4  ;;  %v2803_v24 = vadd.f32 %v1252_v58, %v1251_v53  ;;  %v3089_v42 = vld [vmem:[#allocation20_spill] sm:$0xff] }
 0x195   : > { %1951 = vpow2.f32 %v916_v14  ;;  %v719_v52 = vmax.f32 %v717_v50, %v718_v51  ;;  %v818_v17 = vrot.slane %v2794_v7, 4  ;;  %v1946_v48 = vpop.eup %1945  ;;  %v1366_v45 = vrot.slane %v1365_v34, 2 }
 0x196   : > { %v1272_v60 = vrot.slane %v1271_v23, 1  ;;  %v996_v31 = vrot.slane %v995_v28, 1  ;;  %v1095_v35 = vadd.f32 %v2796_v40, %v1094_v30  ;;  %v1135_v61 = vmul.f32 %v1946_v48, %v2743_v3 }
 0x197   : > { %v2810_v47 = vadd.f32 %v3088_v20, %v2429_v39  ;;  %v720_v25 = vrot.slane %v719_v52, 1  ;;  %v819_v53 = vmax.f32 %v2794_v7, %v818_v17  ;;  %v1371_v26 = vadd.f32 %v1370_v8, %v1203_v33 }
 0x198   : > { %v1273_v46 = vadd.f32 %v1272_v60, %v1271_v23  ;;  %v997_v5 = vadd.f32 %v996_v31, %v995_v28  ;;  %v1096_v0 = vrot.slane %v1095_v35, 2  ;;  %v1187_v36 = vmul.f32 %v1135_v61, %v2721_v4 }
 0x199   : > { %v721_v41 = vmax.f32 %v719_v52, %v720_v25  ;;  %v820_v11 = vrot.slane %v819_v53, 2  ;;  %v2816_v58 = vadd.f32 %v3089_v42, %v2258_v49  ;;  %v1948_v3 = vpop.eup %1947  ;;  %v2818_v1 = vadd.f32 %v1366_v45, %v1365_v34 }
 0x19a   : > { %v2821_v19 = vsel %vm1457_vm2, %v1273_v46, %v1469_v13  ;;  %1953 = vrcp.f32 %v997_v5  ;;  %v1097_v50 = vadd.f32 %v1096_v0, %v1095_v35  ;;  %v1274_v37 = vrot.slane %v1187_v36, 4 }
 0x19b   : > { %v1169_v33 = vmul.f32 %v1948_v3, %v2751_v6  ;;  %v838_v15 = vsub.f32 %v2772_v27, %v721_v41  ;;  %v821_v4 = vmax.f32 %v819_v53, %v820_v11  ;;  %v1372_v12 = vrot.slane %v1371_v26, 2 }
 0x19c   : > { %v1098_v14 = vrot.slane %v1097_v50, 1  ;;  %v722_v51 = vrot.slane %v2816_v58, 4  ;;  %v2828_v23 = vadd.f32 %v2506_v32, %v2258_v49  ;;  %v1275_v13 = vadd.f32 %v1274_v37, %v1187_v36 }
 0x19d   : > { %v2830_v34 = vpop.eup %1949  ;;  %v1204_v8 = vmul.f32 %v1169_v33, %v612_v59  ;;  %v884_v28 = vmul.f32 1.442695, %v838_v15  ;;  %v822_v30 = vrot.slane %v821_v4, 1  ;;  %v2841_v53 = vadd.f32 %v1372_v12, %v1371_v26  ;;  %v1401_v26 = vld [vmem:[%s3054_s3 + $0x8] sm:$0xff] }
 0x19e   : > { %v1099_v52 = vadd.f32 %v1098_v14, %v1097_v50  ;;  %v998_v6 = vrot.slane %v2830_v34, 4  ;;  %v723_v27 = vmax.f32 %v2816_v58, %v722_v51  ;;  %v728_v17 = vrot.slane %v2828_v23, 4  ;;  %v1402_v51 = vld [vmem:[%s3054_s3 + $0x10] sm:$0xff] }
 0x19f   : > { %v2835_v48 = vpop.eup %1951  ;;  %v1276_v45 = vrot.slane %v1275_v13, 2  ;;  %v1376_v60 = vrot.slane %v1204_v8, 4  ;;  %1955 = vpow2.f32 %v884_v28  ;;  %v823_v49 = vmax.f32 %v821_v4, %v822_v30 }
 0x1a0   : > { %1957 = vrcp.f32 %v1099_v52  ;;  %v999_v32 = vadd.f32 %v2830_v34, %v998_v6  ;;  %v1100_v59 = vrot.slane %v2835_v48, 4  ;;  %v724_v31 = vrot.slane %v723_v27, 2  ;;  %v1403_v52 = vld [vmem:[%s3054_s3 + $0x18] sm:$0xff]  ;;  %v1404_v6 = vld [vmem:[%s3054_s3 + $0x20] sm:$0xff] }
 0x1a1   : > { %v1277_v35 = vadd.f32 %v1276_v45, %v1275_v13  ;;  %v1377_v61 = vadd.f32 %v1376_v60, %v1204_v8  ;;  %v855_v20 = vsub.f32 %v2794_v7, %v823_v49  ;;  %v729_v25 = vmax.f32 %v2828_v23, %v728_v17  ;;  %v1400_v7 = vld [vmem:[%s3054_s3] sm:$0xff] }
 0x1a2   : > { %v1000_v46 = vrot.slane %v999_v32, 2  ;;  %v1101_v5 = vadd.f32 %v2835_v48, %v1100_v59  ;;  %v725_v0 = vmax.f32 %v723_v27, %v724_v31  ;;  %v1368_v50 = vrot.slane %v2818_v1, 1 }
 0x1a3   : > { %v1278_v36 = vrot.slane %v1277_v35, 1  ;;  %v1378_v41 = vrot.slane %v1377_v61, 2  ;;  %v918_v11 = vmul.f32 1.442695, %v855_v20  ;;  %v730_v42 = vrot.slane %v729_v25, 2 }
 0x1a4   : > { %v1954_v3 = vpop.eup %1953  ;;  %v1001_v37 = vadd.f32 %v1000_v46, %v999_v32  ;;  %v1102_v33 = vrot.slane %v1101_v5, 2  ;;  %v726_v15 = vrot.slane %v725_v0, 1  ;;  %v1374_v27 = vrot.slane %v2841_v53, 1 }
 0x1a5   : > { %v1279_v4 = vadd.f32 %v1278_v36, %v1277_v35  ;;  %v2851_v12 = vadd.f32 %v1378_v41, %v1377_v61  ;;  %v1137_v14 = vmul.f32 %v1954_v3, %v2776_v9  ;;  %1959 = vpow2.f32 %v918_v11  ;;  %v1405_v9 = vld [vmem:[%s3054_s3 + $0x28] sm:$0xff] }
 0x1a6   : > { %v1002_v13 = vrot.slane %v1001_v37, 1  ;;  %v1103_v8 = vadd.f32 %v1102_v33, %v1101_v5  ;;  %v727_v28 = vmax.f32 %v725_v0, %v726_v15  ;;  %v731_v30 = vmax.f32 %v729_v25, %v730_v42 }
 0x1a7   : > { %v2869_v17 = vsel %vm1459_vm3, %v1279_v4, %v2821_v19  ;;  %v1188_v45 = vmul.f32 %v1137_v14, %v2787_v2  ;;  %v1771_v60 = vpack.c.bf16 %v1401_v26, %v1400_v7  ;;  %v1380_v61 = vrot.slane %v2851_v12, 1 }
 0x1a8   : > { %v1003_v49 = vadd.f32 %v1002_v13, %v1001_v37  ;;  %v1104_v32 = vrot.slane %v1103_v8, 1  ;;  %v839_v59 = vsub.f32 %v2816_v58, %v727_v28  ;;  %v732_v31 = vrot.slane %v731_v30, 1  ;;  %v1409_v28 = vld [vmem:[%s3054_s3 + $0x48] sm:$0xff] }
 0x1a9   : > { %v2873_v35 = vpop.eup %1955  ;;  %v1280_v20 = vrot.slane %v1188_v45, 4  ;;  %1772 = vmatprep.subr.bf16.mxu1 %v1771_v60  ;;  %v1775_v25 = vpack.c.bf16 %v1403_v52, %v1402_v51  ;;  %v1779_v46 = vpack.c.bf16 %v1405_v9, %v1404_v6  ;;  %v1249_v11 = vadd.f32 %v1248_v16, %v2727_v56 }
 0x1aa   : > { %v1958_v5 = vpop.eup %1957  ;;  %1961 = vrcp.f32 %v1003_v49  ;;  %v1105_v19 = vadd.f32 %v1104_v32, %v1103_v8  ;;  %v1004_v0 = vrot.slane %v2873_v35, 4  ;;  %v886_v2 = vmul.f32 1.442695, %v839_v59  ;;  %1774 = vmatpush3.bf16.msra.mxu1 %v1771_v60 }
 0x1ab   : > { %v1281_v36 = vadd.f32 %v1280_v20, %v1188_v45  ;;  %v1171_v41 = vmul.f32 %v1958_v5, %v2796_v40  ;;  %v733_v58 = vmax.f32 %v731_v30, %v732_v31  ;;  %1776 = vmatprep.subr.bf16.mxu1 %v1775_v25  ;;  %v1254_v3 = vrot.slane %v2803_v24, 1 }
 0x1ac   : > { %1963 = vrcp.f32 %v1105_v19  ;;  %v1005_v42 = vadd.f32 %v2873_v35, %v1004_v0  ;;  %v1458_v37 = vsel %vm1457_vm2, %v2596_v43, %v2526_v29  ;;  %v1369_v32 = vadd.f32 %v1368_v50, %v2818_v1  ;;  %v3090_v1 = vld [vmem:[#allocation15_spill] sm:$0xff] }
 0x1ad   : > { %v1282_v33 = vrot.slane %v1281_v36, 2  ;;  %v1205_v15 = vmul.f32 %v1171_v41, %v2800_v54  ;;  %1965 = vpow2.f32 %v886_v2  ;;  %v840_v40 = vsub.f32 %v2828_v23, %v733_v58 }
 0x1ae   : > { %v1006_v7 = vrot.slane %v1005_v42, 2  ;;  %1778 = vmatpush3.bf16.msra.mxu1 %v1775_v25  ;;  %v1255_v26 = vadd.f32 %v1254_v3, %v2803_v24  ;;  %v1460_v56 = vsel %vm1459_vm3, %v2603_v63, %v1458_v37  ;;  %v1406_v24 = vld [vmem:[%s3054_s3 + $0x30] sm:$0xff]  ;;  %v1407_v63 = vld [vmem:[%s3054_s3 + $0x38] sm:$0xff]  ;;  %v1375_v5 = vadd.f32 %v1374_v27, %v2841_v53 }
 0x1af   : > { %v2891_v16 = vpop.eup %1959  ;;  %v1283_v4 = vadd.f32 %v1282_v33, %v1281_v36  ;;  %v1382_v14 = vrot.slane %v1205_v15, 4  ;;  %v888_v51 = vmul.f32 1.442695, %v840_v40  ;;  %1780 = vmatprep.subr.bf16.mxu1 %v1779_v46  ;;  %v1462_v29 = vsel %vm1461_vm4, %v2675_v62, %v1460_v56  ;;  %v1408_v62 = vld [vmem:[%s3054_s3 + $0x40] sm:$0xff]  ;;  %v1410_v25 = vld [vmem:[%s3054_s3 + $0x50] sm:$0xff] }
 0x1b0   : > { %v1007_v43 = vadd.f32 %v1006_v7, %v1005_v42  ;;  %v1106_v54 = vrot.slane %v2891_v16, 4  ;;  %v1464_v8 = vsel %vm1463_vm5, %v2678_v22, %v1462_v29  ;;  %v1783_v22 = vpack.c.bf16 %v1407_v63, %v1406_v24 }
 0x1b1   : > { %v1284_v23 = vrot.slane %v1283_v4, 1  ;;  %v1383_v13 = vadd.f32 %v1382_v14, %v1205_v15  ;;  %1967 = vpow2.f32 %v888_v51  ;;  %v1466_v6 = vsel %vm1465_vm6, %v1249_v11, %v1464_v8 }
 0x1b2   : > { %v1008_v30 = vrot.slane %v1007_v43, 1  ;;  %v1107_v52 = vadd.f32 %v2891_v16, %v1106_v54  ;;  %1782 = vmatpush3.bf16.msra.mxu1 %v1779_v46  ;;  %v1468_v60 = vsel %vm1467_vm7, %v1255_v26, %v1466_v6  ;;  %v1787_v20 = vpack.c.bf16 %v1409_v28, %v1408_v62  ;;  %v1411_v46 = vld [vmem:[%s3054_s3 + $0x58] sm:$0xff] }
 0x1b3   : > { %v1285_v9 = vadd.f32 %v1284_v23, %v1283_v4  ;;  %v1384_v45 = vrot.slane %v1383_v13, 2  ;;  %1757 = vmatprep.mubr.f32.mxu1 %v1468_v60  ;;  %v624_v50 = vadd.f32 %v3090_v1, %v2429_v39  ;;  %1784 = vmatprep.subr.bf16.mxu1 %v1783_v22  ;;  %v1381_v36 = vadd.f32 %v1380_v61, %v2851_v12  ;;  %v1412_v12 = vld [vmem:[%s3054_s3 + $0x60] sm:$0xff]  ;;  %v1415_v54 = vld [vmem:[%s3054_s3 + $0x78] sm:$0xff] }
 0x1b4   : > { %v1962_v49 = vpop.eup %1961  ;;  %v1009_v59 = vadd.f32 %v1008_v30, %v1007_v43  ;;  %v1108_v31 = vrot.slane %v1107_v52, 2  ;;  %v1791_v42 = vpack.c.bf16 %v1411_v46, %v1410_v25  ;;  %v1484_v61 = vsel %vm1457_vm2, %v1369_v32, %v2762_v10  ;;  %v1414_v43 = vld [vmem:[%s3054_s3 + $0x70] sm:$0xff] }
 0x1b5   : > { %v1385_v19 = vadd.f32 %v1384_v45, %v1383_v13  ;;  %v1139_v0 = vmul.f32 %v1962_v49, %v2830_v34  ;;  %v1472_v58 = vsel %vm1461_vm4, %v1285_v9, %v2869_v17  ;;  %v1413_v17 = vld [vmem:[%s3054_s3 + $0x68] sm:$0xff]  ;;  %v1485_v7 = vsel %vm1459_vm3, %v1375_v5, %v1484_v61 }
 0x1b6   : > { %v1964_v2 = vpop.eup %1963  ;;  %1969 = vrcp.f32 %v1009_v59  ;;  %v1109_v41 = vadd.f32 %v1108_v31, %v1107_v52  ;;  %1786 = vmatpush3.bf16.msra.mxu1 %v1783_v22  ;;  %v1795_v14 = vpack.c.bf16 %v1413_v17, %v1412_v12  ;;  %v1486_v51 = vsel %vm1461_vm4, %v1381_v36, %v1485_v7  ;;  %v3091_v22 = vld [vmem:[#allocation17_spill] sm:$0xff]  ;;  %v3093_v12 = vld [vmem:[#allocation16_spill] sm:$0xff] }
 0x1b7   : > { %v2933_v11 = vpop.eup %1965  ;;  %v1386_v53 = vrot.slane %v1385_v19, 1  ;;  %v1189_v34 = vmul.f32 %v1139_v0, %v2810_v47  ;;  %v1173_v27 = vmul.f32 %v1964_v2, %v2835_v48  ;;  %1788 = vmatprep.subr.bf16.mxu1 %v1787_v20  ;;  %v1799_v30 = vpack.c.bf16 %v1415_v54, %v1414_v43  ;;  %v3095_v7 = vld [vmem:[#allocation21_spill] sm:$0xff] }
 0x1b8   : > { %v1010_v3 = vrot.slane %v2933_v11, 4  ;;  %v1110_v37 = vrot.slane %v1109_v41, 1  ;;  %v528_v49 = vadd.f32 %v3091_v22, %v2429_v39  ;;  %v1310_v17 = vrot.slane %v3093_v12, 4 }
 0x1b9   : > { %v1387_v33 = vadd.f32 %v1386_v53, %v1385_v19  ;;  %v1286_v47 = vrot.slane %v1189_v34, 4  ;;  %v1206_v15 = vmul.f32 %v1173_v27, %v624_v50 }
 0x1ba   : > { %v1011_v48 = vadd.f32 %v2933_v11, %v1010_v3  ;;  %v1111_v40 = vadd.f32 %v1110_v37, %v1109_v41  ;;  %1790 = vmatpush3.bf16.msra.mxu1 %v1787_v20  ;;  %v3092_v41 = vld [vmem:[#allocation18_spill] sm:$0xff] }
 0x1bb   : > { %v2948_v26 = vpop.eup %1967  ;;  %v1287_v56 = vadd.f32 %v1286_v47, %v1189_v34  ;;  %v1388_v4 = vrot.slane %v1206_v15, 4  ;;  %1792 = vmatprep.subr.bf16.mxu1 %v1791_v42  ;;  %v1487_v24 = vsel %vm1463_vm5, %v1387_v33, %v1486_v51  ;;  %v3094_v47 = vld [vmem:[#allocation19_spill] sm:$0xff]  ;;  %v1328_v51 = vrot.slane %v2522_v38, 4 }
 0x1bc   : > { %v1012_v29 = vrot.slane %v1011_v48, 2  ;;  %v1016_v10 = vrot.slane %v2948_v26, 4  ;;  %1971 = vrcp.f32 %v1111_v40 }
 0x1bd   : > { %v1288_v63 = vrot.slane %v1287_v56, 2  ;;  %v1389_v23 = vadd.f32 %v1388_v4, %v1206_v15  ;;  %v1316_v15 = vrot.slane %v3094_v47, 4 }
 0x1be   : > { %v1013_v13 = vadd.f32 %v1012_v29, %v1011_v48  ;;  %v1017_v8 = vadd.f32 %v2948_v26, %v1016_v10  ;;  %1794 = vmatpush3.bf16.msra.mxu1 %v1791_v42  ;;  %v1322_v48 = vrot.slane %v2508_v44, 4  ;;  %v1334_v29 = vrot.slane %v2541_v18, 4 }
 0x1bf   : > { %v1289_v62 = vadd.f32 %v1288_v63, %v1287_v56  ;;  %v1390_v28 = vrot.slane %v1389_v23, 2  ;;  %1796 = vmatprep.subr.bf16.mxu1 %v1795_v14  ;;  %v1317_v63 = vadd.f32 %v1316_v15, %v3094_v47 }
 0x1c0   : > { %v1970_v52 = vpop.eup %1969  ;;  %v1014_v6 = vrot.slane %v1013_v13, 1  ;;  %v1018_v9 = vrot.slane %v1017_v8, 2 }
 0x1c1   : > { %v1290_v45 = vrot.slane %v1289_v62, 1  ;;  %v1391_v60 = vadd.f32 %v1390_v28, %v1389_v23  ;;  %v1141_v32 = vmul.f32 %v1970_v52, %v2873_v35  ;;  %v630_v35 = vadd.f32 %v3092_v41, %v2429_v39 }
 0x1c2   : > { %v1015_v59 = vadd.f32 %v1014_v6, %v1013_v13  ;;  %v1019_v31 = vadd.f32 %v1018_v9, %v1017_v8  ;;  %1798 = vmatpush3.bf16.msra.mxu1 %v1795_v14  ;;  %v1311_v14 = vadd.f32 %v1310_v17, %v3093_v12  ;;  %v1323_v23 = vadd.f32 %v1322_v48, %v2508_v44 }
 0x1c3   : > { %v1291_v20 = vadd.f32 %v1290_v45, %v1289_v62  ;;  %v1392_v25 = vrot.slane %v1391_v60, 1  ;;  %v1190_v46 = vmul.f32 %v1141_v32, %v528_v49  ;;  %1800 = vmatprep.subr.bf16.mxu1 %v1799_v30  ;;  %v1340_v13 = vrot.slane %v2577_v55, 4 }
 0x1c4   : > { %1973 = vrcp.f32 %v1015_v59  ;;  %v1020_v5 = vrot.slane %v1019_v31, 1  ;;  %v540_v62 = vadd.f32 %v2512_v21, %v2429_v39  ;;  %v1312_v52 = vrot.slane %v1311_v14, 2 }
 0x1c5   : > { %v1292_v19 = vrot.slane %v1190_v46, 4  ;;  %v1473_v0 = vsel %vm1463_vm5, %v1291_v20, %v1472_v58  ;;  %v1393_v1 = vadd.f32 %v1392_v25, %v1391_v60  ;;  %v1329_v6 = vadd.f32 %v1328_v51, %v2522_v38 }
 0x1c6   : > { %v1972_v50 = vpop.eup %1971  ;;  %v1021_v2 = vadd.f32 %v1020_v5, %v1019_v31  ;;  %1802 = vmatpush3.bf16.msra.mxu1 %v1799_v30  ;;  %v1335_v9 = vadd.f32 %v1334_v29, %v2541_v18  ;;  %v1318_v44 = vrot.slane %v1317_v63, 2  ;;  %v1324_v49 = vrot.slane %v1323_v23, 2 }
 0x1c7   : > { %v1293_v36 = vadd.f32 %v1292_v19, %v1190_v46  ;;  %v1175_v53 = vmul.f32 %v1972_v50, %v2891_v16  ;;  %v1488_v34 = vsel %vm1465_vm6, %v1393_v1, %v1487_v24  ;;  %v534_v16 = vadd.f32 %v3095_v7, %v2429_v39 }
 0x1c8   : > { %1975 = vrcp.f32 %v1021_v2  ;;  %v1341_v32 = vadd.f32 %v1340_v13, %v2577_v55  ;;  %v1330_v21 = vrot.slane %v1329_v6, 2  ;;  %v1336_v25 = vrot.slane %v1335_v9, 2 }
 0x1c9   : > { %v1294_v27 = vrot.slane %v1293_v36, 2  ;;  %v1207_v42 = vmul.f32 %v1175_v53, %v630_v35  ;;  %v1319_v5 = vadd.f32 %v1318_v44, %v1317_v63  ;;  %v1325_v19 = vadd.f32 %v1324_v49, %v1323_v23 }
 0x1ca   : > { %v1342_v18 = vrot.slane %v1341_v32, 2  ;;  %v1331_v2 = vadd.f32 %v1330_v21, %v1329_v6  ;;  %v1337_v55 = vadd.f32 %v1336_v25, %v1335_v9 }
 0x1cb   : > { %v1295_v3 = vadd.f32 %v1294_v27, %v1293_v36  ;;  %v1394_v37 = vrot.slane %v1207_v42, 4  ;;  %v1320_v35 = vrot.slane %v1319_v5, 1  ;;  %v1326_v27 = vrot.slane %v1325_v19, 1 }
 0x1cc   : > { %v1343_v53 = vadd.f32 %v1342_v18, %v1341_v32  ;;  %v1338_v17 = vrot.slane %v1337_v55, 1 }
 0x1cd   : > { %v1296_v58 = vrot.slane %v1295_v3, 1  ;;  %v1395_v61 = vadd.f32 %v1394_v37, %v1207_v42  ;;  %v1332_v37 = vrot.slane %v1331_v2, 1  ;;  %v1327_v47 = vadd.f32 %v1326_v27, %v1325_v19 }
 0x1ce   : > { %v1974_v33 = vpop.eup %1973 }
 0x1cf   : > { %v1297_v40 = vadd.f32 %v1296_v58, %v1295_v3  ;;  %v1143_v56 = vmul.f32 %v1974_v33, %v2933_v11  ;;  %v1396_v4 = vrot.slane %v1395_v61, 2  ;;  %v1346_v11 = vrot.slane %v2662_v57, 4 }
 0x1d0   : > { %v1344_v33 = vrot.slane %v1343_v53, 1 }
 0x1d1   : > { %v1191_v10 = vmul.f32 %v1143_v56, %v534_v16  ;;  %v1397_v43 = vadd.f32 %v1396_v4, %v1395_v61  ;;  %v1474_v54 = vsel %vm1465_vm6, %v1297_v40, %v1473_v0  ;;  %v1347_v59 = vadd.f32 %v1346_v11, %v2662_v57 }
 0x1d2   : > { %v1976_v24 = vpop.eup %1975  ;;  %v1321_v61 = vadd.f32 %v1320_v35, %v1319_v5  ;;  %v1333_v40 = vadd.f32 %v1332_v37, %v1331_v2  ;;  %v1339_v16 = vadd.f32 %v1338_v17, %v1337_v55  ;;  %v1345_v4 = vadd.f32 %v1344_v33, %v1343_v53 }
 0x1d3   : > { %v1298_v8 = vrot.slane %v1191_v10, 4  ;;  %v1145_v28 = vmul.f32 %v1976_v24, %v2948_v26  ;;  %v1398_v30 = vrot.slane %v1397_v43, 1  ;;  %v1313_v26 = vadd.f32 %v1312_v52, %v1311_v14 }
 0x1d4   : > { %v1348_v0 = vrot.slane %v1347_v59, 2 }
 0x1d5   : > { %v1299_v45 = vadd.f32 %v1298_v8, %v1191_v10  ;;  %v1192_v60 = vmul.f32 %v1145_v28, %v540_v62  ;;  %v1399_v22 = vadd.f32 %v1398_v30, %v1397_v43  ;;  %v1314_v36 = vrot.slane %v1313_v26, 1 }
 0x1d7   : > { %v1300_v31 = vrot.slane %v1299_v45, 2  ;;  %v1304_v20 = vrot.slane %v1192_v60, 4  ;;  %v1489_v39 = vsel %vm1467_vm7, %v1399_v22, %v1488_v34  ;;  %v1349_v34 = vadd.f32 %v1348_v0, %v1347_v59 }
 0x1d8   : > { %v1315_v12 = vadd.f32 %v1314_v36, %v1313_v26 }
 0x1d9   : > { %v1301_v46 = vadd.f32 %v1300_v31, %v1299_v45  ;;  %v1305_v38 = vadd.f32 %v1304_v20, %v1192_v60  ;;  %v1350_v48 = vrot.slane %v1349_v34, 1 }
 0x1db   : > { %v1302_v1 = vrot.slane %v1301_v46, 1  ;;  %v1306_v50 = vrot.slane %v1305_v38, 2  ;;  %v1351_v51 = vadd.f32 %v1350_v48, %v1349_v34 }
 0x1dd   : > { %v1303_v41 = vadd.f32 %v1302_v1, %v1301_v46  ;;  %v1307_v57 = vadd.f32 %v1306_v50, %v1305_v38 }
 0x1df   : > { %v1308_v42 = vrot.slane %v1307_v57, 1  ;;  %v1475_v3 = vsel %vm1467_vm7, %v1303_v41, %v1474_v54  ;;  %v1698_v54 = vld [vmem:[%s3055_s4] ss:$0 sm:$0xff] }
 0x1e0   : > { %1758 = vmatmul.mubr.f32.vlgmr.msra.gmra.mrb[30].mxu1 %v1475_v3 }
 0x1e1   : > { %v1309_v58 = vadd.f32 %v1308_v42, %v1307_v57 }
 0x1e3   : > { %v1476_v15 = vsel %vm1455_vm1, %v1315_v12, %v1309_v58 }
 0x1e4   : > { %v1477_v7 = vsel %vm1457_vm2, %v1321_v61, %v1476_v15 }
 0x1e5   : > { %v1478_v56 = vsel %vm1459_vm3, %v1327_v47, %v1477_v7 }
 0x1e6   : > { %v1479_v14 = vsel %vm1461_vm4, %v1333_v40, %v1478_v56 }
 0x1e7   : > { %v1480_v29 = vsel %vm1463_vm5, %v1339_v16, %v1479_v14 }
 0x1e8   : > { %v1481_v10 = vsel %vm1465_vm6, %v1345_v4, %v1480_v29 }
 0x1e9   : > { %v1482_v43 = vsel %vm1467_vm7, %v1351_v51, %v1481_v10 }
 0x1ea   : > { %1760 = vmatprep.mubr.f32.mxu1 %v1482_v43 }
 0x1eb   : > { %1761 = vmatmul.mubr.f32.gmra.mrb[32].mxu1 %v1489_v39 }
 0x2b3   : > { %v1759_v24 = vpop.f32.mrb[30].mxu1 }
 0x2b4   : > { %v1566_v63 = vadd.f32 %v1759_v24, %v1698_v54  ;;  %v1560_v23 = vpop.f32.mrb[31].mxu1 }
 0x2b5   : > { %v1561_v13 = vadd.f32 %v1698_v54, %v1560_v23 }
 0x2b6   : > { %1580 = vst [vmem:[%s218_s16 + $0x8] sm:$0xff] %v1566_v63 }
 0x2b7   : > { %1579 = vst [vmem:[%s218_s16] sm:$0xff] %v1561_v13 }
 0x2be   : > { %v1762_v11 = vpop.f32.mrb[32].mxu1 }
 0x2bf   : > { %v1576_v8 = vadd.f32 %v1762_v11, %v1698_v54  ;;  %v1570_v62 = vpop.f32.mrb[33].mxu1 }
 0x2c0   : > { %v1571_v28 = vadd.f32 %v1698_v54, %v1570_v62 }
 0x2c1   : > { %1582 = vst [vmem:[%s218_s16 + $0x18] sm:$0xff] %v1576_v8 }
 0x2c2   : > { %1581 = vst [vmem:[%s218_s16 + $0x10] sm:$0xff] %v1571_v28 }
 0x2c3   : > { %1990 = shalt.err (!%p1987_p3)
}
 0x2c4   : > { %s1991_s10 = scalar_lea.hbm %s3008_s30, 512  ;;  %s1995_s13 = scalar_lea.hbm %s3056_s5, 1024 }
 0x2c5   : > { %p1992_p4 = scmp.ne.s32.totalorder %s3008_s30, %s1991_s10  ;;  %p1996_p9 = scmp.lt.u32.totalorder %s3008_s30, %s3056_s5 }
 0x2c6   : > { %p1997_p10 = scmp.lt.u32.totalorder %s1995_s13, %s1991_s10  ;;  %p1999_p12 = scmp.lt.u32.totalorder %s1991_s10, %s3008_s30 }
 0x2c7   : > { %p1993_p7 = pnand %p1992_p4, %p2113_p5 }
 0x2c8   : > { %p1998_p11 = por %p1997_p10, %p1996_p9 }
 0x2c9   : > { %p1994_p8 = pneg %p1993_p7 }
 0x2ca   : > { %p2000_p13 = por %p1999_p12, %p1998_p11 }
 0x2cc   : > { %p2001_p0 = pnand %p2000_p13, %p1994_p8 }
 0x2ce   : > { %2004 = shalt.err (!%p2001_p0)
}
 0x2cf   : > { %s2043_s16 = smov 128   ;;  %s2044_s23 = smov 8  }
 0x2d0   : > { %1807 = dma.vmem_to_hbm [thread:$0]  (%p2113_p5), %s3003_s17, 512, %s3008_s30, %s3010_s6, %s2043_s16, %s2043_s16, %s2044_s23  }
 0x2d1 PF: > { %p1813_p1 = scmp.ge.s32.totalorder %s2039_s21, 2  ;;  %s1612_s25 = sand.u32 1, %s2027_s18  }
 0x2d2   : > { %s1613_s26 = scalar_lea.sflag [#allocation3], %s1612_s25 }
 0x2d3   : > { %p1810_p2 = pnand %p1813_p1, %p2117_p6 }
 0x2d5   : > { %2022 = dma.done.wait (!%p1810_p2), %s1613_s26, 512  }
 0x2d6   : > { %2024 = vsyncadd (!%p1810_p2), %s1613_s26, 4294966784  ;;  %p15_p3 = scmp.ge.s32.totalorder %s2100_s24, 4   ;;  %s3096_s18 = smov %s2031_s19 }
 0x2d7   : > { %s3097_s19 = smov %s2035_s20  ;;  %s3098_s20 = smov %s2111_s27 }
 0x2d8   : > { %s3099_s21 = smov %s2100_s24  ;;  %17 = sbr.rel (!%p15_p3) target bundleno = 3 (0x3), region = 75 }
 0x2df   :  { %1618 = vsyncpa [#allocation3], 1 }
 0x2e0   :  { %1620 = vsyncpa [#allocation3 + $0x1], 1 }

</bundles_post_ra>
